<compile_context>
chip_gen: v5e
topology: v5e:2x2
jax: 0.10.0
libtpu: 0.0.40
codegen_flags: <defaults>
</compile_context>

<pallas_src>
import math

import jax
import jax.numpy as jnp
from jax.experimental import pallas as pl
from jax.experimental.pallas import tpu as pltpu


def lstm_aggre_kernel(x_ref, wbig_ref, whh_ref, b_ref, out_ref, gx_ref):
    """Permuted-order LSTM over T neighbours; writes the final hidden state.

    x_ref    : (TB, T*D)    bf16  lane-dense input block
    wbig_ref : (T*D, T*4H)  bf16  block-diagonal W_ih^T, columns already in
                                  the random permutation order (g rows x2)
    whh_ref  : (H, 4H)      bf16  W_hh^T (g rows x2), VMEM-resident
    b_ref    : (1, T*4H)    f32   bias (b_ih + b_hh) tiled T times (g slice x2)
    out_ref  : (TB, H)      f32   final hidden state h_T
    gx_ref   : (TB, T*4H)   f32   VMEM scratch: hoisted input projection + bias
    """
    TB = x_ref.shape[0]
    H = whh_ref.shape[0]
    G = 4 * H
    T = gx_ref.shape[1] // G

    whh = whh_ref[...]                                    # (H, 4H) bf16

    # ---- Single fused input projection for all T timesteps (off the serial
    # chain), bias folded in with one sublane-broadcast add. ----
    gx_ref[...] = (
        jnp.dot(x_ref[...], wbig_ref[...], preferred_element_type=jnp.float32)
        + b_ref[...]
    )

    h = jnp.zeros((TB, H), jnp.float32)
    c = jnp.zeros((TB, H), jnp.float32)

    # ---- Fully unrolled T-step recurrence: only h @ W_hh + gate math on the
    # critical path; gates scratch is read with static 128-lane slices. ----
    for s in range(T):
        gates = gx_ref[:, s * G:(s + 1) * G] + jnp.dot(
            h.astype(jnp.bfloat16), whh, preferred_element_type=jnp.float32)
        # One full-width sigmoid; g pre-activation was pre-scaled by 2, so
        # tanh(x) = 2*sigmoid(2x) - 1.  (PyTorch gate order: i, f, g, o.)
        sig = jax.nn.sigmoid(gates)
        i_g = sig[:, 0 * H:1 * H]
        f_g = sig[:, 1 * H:2 * H]
        g_g = 2.0 * sig[:, 2 * H:3 * H] - 1.0
        o_g = sig[:, 3 * H:4 * H]
        c = f_g * c + i_g * g_g
        h = o_g * jnp.tanh(c)

    # H = 32 < 128 lanes: masked store, but output bytes are tiny at this H.
    out_ref[...] = h.astype(out_ref.dtype)


def lstm_aggregator_forward(neighbours, w_ih, w_hh, b_ih, b_hh, perm_key):
    """LSTMAggregator.aggre: random neighbour permutation + LSTM, return h_T.

    neighbours : (B, T, indim)   node.mailbox['m']
    w_ih       : (4H, indim)     PyTorch lstm.weight_ih_l0
    w_hh       : (4H, H)         PyTorch lstm.weight_hh_l0
    b_ih, b_hh : (4H,)           PyTorch lstm biases
    returns    : (B, H)          lstm_out[:, -1, :]
    """
    B, T, D = neighbours.shape
    H = w_hh.shape[1]
    G = 4 * H

    # torch.randperm over the neighbour (time) axis, shared across the batch.
    perm = jax.random.permutation(perm_key, T)

    # Pre-scale the g-gate (cell-candidate) slice by 2 so the kernel can use a
    # single full-width sigmoid (tanh(x) = 2*sigmoid(2x) - 1).  The x2 is exact
    # in bf16, so MXU results are exactly 2x the unscaled pre-activations.
    gate_scale = jnp.ones((G,), jnp.float32).at[2 * H:3 * H].set(2.0)
    wih_t = jnp.asarray(w_ih, jnp.float32).T * gate_scale[None, :]       # (D, 4H)
    whh_t = (jnp.asarray(w_hh, jnp.float32).T * gate_scale[None, :]
             ).astype(jnp.bfloat16)                                      # (H, 4H)
    bias = (jnp.asarray(b_ih, jnp.float32)
            + jnp.asarray(b_hh, jnp.float32)) * gate_scale               # (4H,)
    bias_tiled = jnp.tile(bias.reshape(1, G), (1, T))                    # (1, T*4H)

    # Block-diagonal, permutation-ordered input projection (T*D, T*4H):
    # column group s holds W_ih^T in the rows of timestep perm[s], zeros
    # elsewhere, so gx[:, s*4H:(s+1)*4H] == x[:, perm[s], :] @ W_ih^T.
    onehot = (perm[None, :] == jnp.arange(T)[:, None]).astype(jnp.float32)   # (t, s)
    wbig = jnp.einsum('ts,dg->tdsg', onehot, wih_t).reshape(T * D, T * G)
    wbig = wbig.astype(jnp.bfloat16)

    # Lane-dense x: (B, T*D) bf16 (T*D = 128 for the reference config).
    x = neighbours.reshape(B, T * D).astype(jnp.bfloat16)

    # Batch (node) tiling.  TB <= 128 keeps the unrolled recurrence (h, c,
    # gates) inside the register file; block == full dim for small B.
    if B <= 128:
        TB, B_pad = B, B
    else:
        TB = 128
        B_pad = pl.cdiv(B, TB) * TB
        x = jnp.pad(x, ((0, B_pad - B), (0, 0)))
    nb = B_pad // TB

    grid_spec = pltpu.PrefetchScalarGridSpec(
        num_scalar_prefetch=0,
        grid=(nb,),
        in_specs=[
            pl.BlockSpec((TB, T * D), lambda i: (i, 0)),      # x: pipelined blocks
            pl.BlockSpec((T * D, T * G), lambda i: (0, 0)),   # wbig: VMEM-resident
            pl.BlockSpec((H, G), lambda i: (0, 0)),           # W_hh: VMEM-resident
            pl.BlockSpec((1, T * G), lambda i: (0, 0)),       # bias: VMEM-resident
        ],
        out_specs=pl.BlockSpec((TB, H), lambda i: (i, 0)),
        scratch_shapes=[pltpu.VMEM((TB, T * G), jnp.float32)],  # hoisted gates_x
    )

    out = pl.pallas_call(
        lstm_aggre_kernel,
        out_shape=jax.ShapeDtypeStruct((B_pad, H), jnp.float32),
        grid_spec=grid_spec,
        # "parallel" is safe everywhere; on v7x with large B, CORE_PARALLEL /
        # core_map over a leading size-2 axis is the lever to engage both TCs.
        compiler_params=pltpu.CompilerParams(
            dimension_semantics=("parallel",)),
    )(x, wbig, whh_t, bias_tiled)
    return out[:B]


def _xavier_uniform(key, shape, gain):
    fan_out, fan_in = shape
    bound = gain * math.sqrt(6.0 / (fan_in + fan_out))
    return jax.random.uniform(key, shape, jnp.float32, -bound, bound)


if __name__ == "__main__":
    # LSTMAggregator(indim=16, hiddim=32); mailbox of 8 neighbours, 2 nodes.
    B, T, indim, hiddim = 2, 8, 16, 32

    root = jax.random.PRNGKey(0)
    k_x, k_wih, k_whh, k_bih, k_bhh, k_perm = jax.random.split(root, 6)

    # Deterministic parameter init (xavier_uniform with relu gain for weights,
    # PyTorch-default uniform(-1/sqrt(H), 1/sqrt(H)) for biases).
    gain = math.sqrt(2.0)  # nn.init.calculate_gain('relu')
    w_ih = _xavier_uniform(k_wih, (4 * hiddim, indim), gain)
    w_hh = _xavier_uniform(k_whh, (4 * hiddim, hiddim), gain)
    b_bound = 1.0 / math.sqrt(hiddim)
    b_ih = jax.random.uniform(k_bih, (4 * hiddim,), jnp.float32, -b_bound, b_bound)
    b_hh = jax.random.uniform(k_bhh, (4 * hiddim,), jnp.float32, -b_bound, b_bound)

    # node.mailbox['m']
    neighbours = jax.random.normal(k_x, (B, T, indim), jnp.float32)

    c = lstm_aggregator_forward(neighbours, w_ih, w_hh, b_ih, b_hh, k_perm)
    jax.block_until_ready(c)
    assert c.shape == (B, hiddim)
    assert bool(jnp.all(jnp.isfinite(c)))

    # Pure-JAX reference of the same recurrence, mirroring kernel numerics
    # (bf16 MXU operands, f32 accumulate, f32 gate math, same permutation,
    # standard sigmoid/tanh gates on unscaled weights).
    perm = jax.random.permutation(k_perm, T)
    x_bf = neighbours.astype(jnp.bfloat16)
    wih_bf = w_ih.T.astype(jnp.bfloat16)
    whh_bf = w_hh.T.astype(jnp.bfloat16)
    bias = (b_ih + b_hh).astype(jnp.float32)
    h = jnp.zeros((B, hiddim), jnp.float32)
    cc = jnp.zeros((B, hiddim), jnp.float32)
    for s in range(T):
        t = int(perm[s])
        gates = (jnp.dot(x_bf[:, t, :], wih_bf, preferred_element_type=jnp.float32)
                 + jnp.dot(h.astype(jnp.bfloat16), whh_bf,
                           preferred_element_type=jnp.float32)
                 + bias)
        i_g = jax.nn.sigmoid(gates[:, 0 * hiddim:1 * hiddim])
        f_g = jax.nn.sigmoid(gates[:, 1 * hiddim:2 * hiddim])
        g_g = jnp.tanh(gates[:, 2 * hiddim:3 * hiddim])
        o_g = jax.nn.sigmoid(gates[:, 3 * hiddim:4 * hiddim])
        cc = f_g * cc + i_g * g_g
        h = o_g * jnp.tanh(cc)

    max_diff = float(jnp.max(jnp.abs(c - h)))
    assert jnp.allclose(c, h, atol=1e-2, rtol=1e-2), f"max_abs_diff={max_diff}"

    print("KERNEL_OK")
</pallas_src>

<mosaic_0001>
module attributes {stable_mosaic.version = 11 : i64} {
  func.func @lstm_aggre_kernel(%arg0: i32, %arg1: memref<2x128xbf16, #tpu.memory_space<vmem>>, %arg2: memref<128x1024xbf16, #tpu.memory_space<vmem>>, %arg3: memref<32x128xbf16, #tpu.memory_space<vmem>>, %arg4: memref<1x1024xf32, #tpu.memory_space<vmem>>, %arg5: memref<2x32xf32, #tpu.memory_space<vmem>>, %arg6: memref<2x1024xf32, #tpu.memory_space<vmem>>) attributes {dimension_semantics = [#tpu.dimension_semantics<parallel>], iteration_bounds = array<i64: 1>, scalar_prefetch = 0 : i64, scratch_operands = 1 : i64, tpu.core_type = #tpu.core_type<tc>, window_params = [{transform_indices = @transform_0, window_bounds = array<i64: 2, 128>}, {pipeline_mode = #tpu.pipeline_mode<synchronous>, transform_indices = @transform_1, window_bounds = array<i64: 128, 1024>}, {pipeline_mode = #tpu.pipeline_mode<synchronous>, transform_indices = @transform_2, window_bounds = array<i64: 32, 128>}, {pipeline_mode = #tpu.pipeline_mode<synchronous>, transform_indices = @transform_3, window_bounds = array<i64: 1, 1024>}, {transform_indices = @transform_4, window_bounds = array<i64: 2, 32>}]} {
    %c0 = arith.constant 0 : index
    %c0_0 = arith.constant 0 : index
    %0 = vector.load %arg3[%c0, %c0_0] : memref<32x128xbf16, #tpu.memory_space<vmem>>, vector<32x128xbf16>
    %c0_1 = arith.constant 0 : index
    %c0_2 = arith.constant 0 : index
    %1 = vector.load %arg1[%c0_1, %c0_2] : memref<2x128xbf16, #tpu.memory_space<vmem>>, vector<2x128xbf16>
    %c0_3 = arith.constant 0 : index
    %c0_4 = arith.constant 0 : index
    %2 = vector.load %arg2[%c0_3, %c0_4] : memref<128x1024xbf16, #tpu.memory_space<vmem>>, vector<128x1024xbf16>
    %cst = arith.constant dense<0.000000e+00> : vector<2x1024xf32>
    %3 = tpu.matmul %1, %2, %cst {dimension_numbers = #tpu.dot_dimension_numbers<[1], [0], [0], [1], [0, 0, 1, 1], [], []>} : vector<2x128xbf16>, vector<128x1024xbf16>, vector<2x1024xf32> -> vector<2x1024xf32>
    %c0_5 = arith.constant 0 : index
    %c0_6 = arith.constant 0 : index
    %4 = vector.load %arg4[%c0_5, %c0_6] : memref<1x1024xf32, #tpu.memory_space<vmem>>, vector<1x1024xf32>
    %5 = vector.broadcast %4 : vector<1x1024xf32> to vector<2x1024xf32>
    %6 = arith.addf %3, %5 : vector<2x1024xf32>
    %c0_7 = arith.constant 0 : index
    %c0_8 = arith.constant 0 : index
    %7 = vector.load %arg6[%c0_7, %c0_8] : memref<2x1024xf32, #tpu.memory_space<vmem>>, vector<2x1024xf32>
    tpu.vector_store %arg6[%c0_7, %c0_8], %6 {strides = array<i32>} : memref<2x1024xf32, #tpu.memory_space<vmem>>, vector<2x1024xf32>,
    %cst_9 = arith.constant 0.000000e+00 : f32
    %8 = vector.broadcast %cst_9 : f32 to vector<2x32xf32>
    %cst_10 = arith.constant 0.000000e+00 : f32
    %9 = vector.broadcast %cst_10 : f32 to vector<2x32xf32>
    %c0_11 = arith.constant 0 : index
    %c0_12 = arith.constant 0 : index
    %10 = vector.load %arg6[%c0_11, %c0_12] : memref<2x1024xf32, #tpu.memory_space<vmem>>, vector<2x128xf32>
    %11 = arith.truncf %8 : vector<2x32xf32> to vector<2x32xbf16>
    %cst_13 = arith.constant dense<0.000000e+00> : vector<2x128xf32>
    %12 = tpu.matmul %11, %0, %cst_13 {dimension_numbers = #tpu.dot_dimension_numbers<[1], [0], [0], [1], [0, 0, 1, 1], [], []>} : vector<2x32xbf16>, vector<32x128xbf16>, vector<2x128xf32> -> vector<2x128xf32>
    %13 = arith.addf %10, %12 : vector<2x128xf32>
    %14 = arith.negf %13 : vector<2x128xf32>
    %15 = math.exp %14 : vector<2x128xf32>
    %cst_14 = arith.constant 1.000000e+00 : f32
    %16 = vector.broadcast %cst_14 : f32 to vector<2x128xf32>
    %17 = arith.addf %16, %15 : vector<2x128xf32>
    %18 = arith.divf %16, %17 : vector<2x128xf32>
    %19 = vector.extract_strided_slice %18 {offsets = [0, 0], sizes = [2, 32], strides = [1, 1]} : vector<2x128xf32> to vector<2x32xf32>
    %20 = vector.extract_strided_slice %18 {offsets = [0, 32], sizes = [2, 32], strides = [1, 1]} : vector<2x128xf32> to vector<2x32xf32>
    %21 = vector.extract_strided_slice %18 {offsets = [0, 64], sizes = [2, 32], strides = [1, 1]} : vector<2x128xf32> to vector<2x32xf32>
    %cst_15 = arith.constant 2.000000e+00 : f32
    %22 = vector.broadcast %cst_15 : f32 to vector<2x32xf32>
    %23 = arith.mulf %22, %21 : vector<2x32xf32>
    %cst_16 = arith.constant 1.000000e+00 : f32
    %24 = vector.broadcast %cst_16 : f32 to vector<2x32xf32>
    %25 = arith.subf %23, %24 : vector<2x32xf32>
    %26 = vector.extract_strided_slice %18 {offsets = [0, 96], sizes = [2, 32], strides = [1, 1]} : vector<2x128xf32> to vector<2x32xf32>
    %27 = arith.mulf %20, %9 : vector<2x32xf32>
    %28 = arith.mulf %19, %25 : vector<2x32xf32>
    %29 = arith.addf %27, %28 : vector<2x32xf32>
    %30 = math.tanh %29 : vector<2x32xf32>
    %31 = arith.mulf %26, %30 : vector<2x32xf32>
    %c0_17 = arith.constant 0 : index
    %c128 = arith.constant 128 : index
    %32 = vector.load %arg6[%c0_17, %c128] : memref<2x1024xf32, #tpu.memory_space<vmem>>, vector<2x128xf32>
    %33 = arith.truncf %31 : vector<2x32xf32> to vector<2x32xbf16>
    %cst_18 = arith.constant dense<0.000000e+00> : vector<2x128xf32>
    %34 = tpu.matmul %33, %0, %cst_18 {dimension_numbers = #tpu.dot_dimension_numbers<[1], [0], [0], [1], [0, 0, 1, 1], [], []>} : vector<2x32xbf16>, vector<32x128xbf16>, vector<2x128xf32> -> vector<2x128xf32>
    %35 = arith.addf %32, %34 : vector<2x128xf32>
    %36 = arith.negf %35 : vector<2x128xf32>
    %37 = math.exp %36 : vector<2x128xf32>
    %cst_19 = arith.constant 1.000000e+00 : f32
    %38 = vector.broadcast %cst_19 : f32 to vector<2x128xf32>
    %39 = arith.addf %38, %37 : vector<2x128xf32>
    %40 = arith.divf %38, %39 : vector<2x128xf32>
    %41 = vector.extract_strided_slice %40 {offsets = [0, 0], sizes = [2, 32], strides = [1, 1]} : vector<2x128xf32> to vector<2x32xf32>
    %42 = vector.extract_strided_slice %40 {offsets = [0, 32], sizes = [2, 32], strides = [1, 1]} : vector<2x128xf32> to vector<2x32xf32>
    %43 = vector.extract_strided_slice %40 {offsets = [0, 64], sizes = [2, 32], strides = [1, 1]} : vector<2x128xf32> to vector<2x32xf32>
    %cst_20 = arith.constant 2.000000e+00 : f32
    %44 = vector.broadcast %cst_20 : f32 to vector<2x32xf32>
    %45 = arith.mulf %44, %43 : vector<2x32xf32>
    %cst_21 = arith.constant 1.000000e+00 : f32
    %46 = vector.broadcast %cst_21 : f32 to vector<2x32xf32>
    %47 = arith.subf %45, %46 : vector<2x32xf32>
    %48 = vector.extract_strided_slice %40 {offsets = [0, 96], sizes = [2, 32], strides = [1, 1]} : vector<2x128xf32> to vector<2x32xf32>
    %49 = arith.mulf %42, %29 : vector<2x32xf32>
    %50 = arith.mulf %41, %47 : vector<2x32xf32>
    %51 = arith.addf %49, %50 : vector<2x32xf32>
    %52 = math.tanh %51 : vector<2x32xf32>
    %53 = arith.mulf %48, %52 : vector<2x32xf32>
    %c0_22 = arith.constant 0 : index
    %c256 = arith.constant 256 : index
    %54 = vector.load %arg6[%c0_22, %c256] : memref<2x1024xf32, #tpu.memory_space<vmem>>, vector<2x128xf32>
    %55 = arith.truncf %53 : vector<2x32xf32> to vector<2x32xbf16>
    %cst_23 = arith.constant dense<0.000000e+00> : vector<2x128xf32>
    %56 = tpu.matmul %55, %0, %cst_23 {dimension_numbers = #tpu.dot_dimension_numbers<[1], [0], [0], [1], [0, 0, 1, 1], [], []>} : vector<2x32xbf16>, vector<32x128xbf16>, vector<2x128xf32> -> vector<2x128xf32>
    %57 = arith.addf %54, %56 : vector<2x128xf32>
    %58 = arith.negf %57 : vector<2x128xf32>
    %59 = math.exp %58 : vector<2x128xf32>
    %cst_24 = arith.constant 1.000000e+00 : f32
    %60 = vector.broadcast %cst_24 : f32 to vector<2x128xf32>
    %61 = arith.addf %60, %59 : vector<2x128xf32>
    %62 = arith.divf %60, %61 : vector<2x128xf32>
    %63 = vector.extract_strided_slice %62 {offsets = [0, 0], sizes = [2, 32], strides = [1, 1]} : vector<2x128xf32> to vector<2x32xf32>
    %64 = vector.extract_strided_slice %62 {offsets = [0, 32], sizes = [2, 32], strides = [1, 1]} : vector<2x128xf32> to vector<2x32xf32>
    %65 = vector.extract_strided_slice %62 {offsets = [0, 64], sizes = [2, 32], strides = [1, 1]} : vector<2x128xf32> to vector<2x32xf32>
    %cst_25 = arith.constant 2.000000e+00 : f32
    %66 = vector.broadcast %cst_25 : f32 to vector<2x32xf32>
    %67 = arith.mulf %66, %65 : vector<2x32xf32>
    %cst_26 = arith.constant 1.000000e+00 : f32
    %68 = vector.broadcast %cst_26 : f32 to vector<2x32xf32>
    %69 = arith.subf %67, %68 : vector<2x32xf32>
    %70 = vector.extract_strided_slice %62 {offsets = [0, 96], sizes = [2, 32], strides = [1, 1]} : vector<2x128xf32> to vector<2x32xf32>
    %71 = arith.mulf %64, %51 : vector<2x32xf32>
    %72 = arith.mulf %63, %69 : vector<2x32xf32>
    %73 = arith.addf %71, %72 : vector<2x32xf32>
    %74 = math.tanh %73 : vector<2x32xf32>
    %75 = arith.mulf %70, %74 : vector<2x32xf32>
    %c0_27 = arith.constant 0 : index
    %c384 = arith.constant 384 : index
    %76 = vector.load %arg6[%c0_27, %c384] : memref<2x1024xf32, #tpu.memory_space<vmem>>, vector<2x128xf32>
    %77 = arith.truncf %75 : vector<2x32xf32> to vector<2x32xbf16>
    %cst_28 = arith.constant dense<0.000000e+00> : vector<2x128xf32>
    %78 = tpu.matmul %77, %0, %cst_28 {dimension_numbers = #tpu.dot_dimension_numbers<[1], [0], [0], [1], [0, 0, 1, 1], [], []>} : vector<2x32xbf16>, vector<32x128xbf16>, vector<2x128xf32> -> vector<2x128xf32>
    %79 = arith.addf %76, %78 : vector<2x128xf32>
    %80 = arith.negf %79 : vector<2x128xf32>
    %81 = math.exp %80 : vector<2x128xf32>
    %cst_29 = arith.constant 1.000000e+00 : f32
    %82 = vector.broadcast %cst_29 : f32 to vector<2x128xf32>
    %83 = arith.addf %82, %81 : vector<2x128xf32>
    %84 = arith.divf %82, %83 : vector<2x128xf32>
    %85 = vector.extract_strided_slice %84 {offsets = [0, 0], sizes = [2, 32], strides = [1, 1]} : vector<2x128xf32> to vector<2x32xf32>
    %86 = vector.extract_strided_slice %84 {offsets = [0, 32], sizes = [2, 32], strides = [1, 1]} : vector<2x128xf32> to vector<2x32xf32>
    %87 = vector.extract_strided_slice %84 {offsets = [0, 64], sizes = [2, 32], strides = [1, 1]} : vector<2x128xf32> to vector<2x32xf32>
    %cst_30 = arith.constant 2.000000e+00 : f32
    %88 = vector.broadcast %cst_30 : f32 to vector<2x32xf32>
    %89 = arith.mulf %88, %87 : vector<2x32xf32>
    %cst_31 = arith.constant 1.000000e+00 : f32
    %90 = vector.broadcast %cst_31 : f32 to vector<2x32xf32>
    %91 = arith.subf %89, %90 : vector<2x32xf32>
    %92 = vector.extract_strided_slice %84 {offsets = [0, 96], sizes = [2, 32], strides = [1, 1]} : vector<2x128xf32> to vector<2x32xf32>
    %93 = arith.mulf %86, %73 : vector<2x32xf32>
    %94 = arith.mulf %85, %91 : vector<2x32xf32>
    %95 = arith.addf %93, %94 : vector<2x32xf32>
    %96 = math.tanh %95 : vector<2x32xf32>
    %97 = arith.mulf %92, %96 : vector<2x32xf32>
    %c0_32 = arith.constant 0 : index
    %c512 = arith.constant 512 : index
    %98 = vector.load %arg6[%c0_32, %c512] : memref<2x1024xf32, #tpu.memory_space<vmem>>, vector<2x128xf32>
    %99 = arith.truncf %97 : vector<2x32xf32> to vector<2x32xbf16>
    %cst_33 = arith.constant dense<0.000000e+00> : vector<2x128xf32>
    %100 = tpu.matmul %99, %0, %cst_33 {dimension_numbers = #tpu.dot_dimension_numbers<[1], [0], [0], [1], [0, 0, 1, 1], [], []>} : vector<2x32xbf16>, vector<32x128xbf16>, vector<2x128xf32> -> vector<2x128xf32>
    %101 = arith.addf %98, %100 : vector<2x128xf32>
    %102 = arith.negf %101 : vector<2x128xf32>
    %103 = math.exp %102 : vector<2x128xf32>
    %cst_34 = arith.constant 1.000000e+00 : f32
    %104 = vector.broadcast %cst_34 : f32 to vector<2x128xf32>
    %105 = arith.addf %104, %103 : vector<2x128xf32>
    %106 = arith.divf %104, %105 : vector<2x128xf32>
    %107 = vector.extract_strided_slice %106 {offsets = [0, 0], sizes = [2, 32], strides = [1, 1]} : vector<2x128xf32> to vector<2x32xf32>
    %108 = vector.extract_strided_slice %106 {offsets = [0, 32], sizes = [2, 32], strides = [1, 1]} : vector<2x128xf32> to vector<2x32xf32>
    %109 = vector.extract_strided_slice %106 {offsets = [0, 64], sizes = [2, 32], strides = [1, 1]} : vector<2x128xf32> to vector<2x32xf32>
    %cst_35 = arith.constant 2.000000e+00 : f32
    %110 = vector.broadcast %cst_35 : f32 to vector<2x32xf32>
    %111 = arith.mulf %110, %109 : vector<2x32xf32>
    %cst_36 = arith.constant 1.000000e+00 : f32
    %112 = vector.broadcast %cst_36 : f32 to vector<2x32xf32>
    %113 = arith.subf %111, %112 : vector<2x32xf32>
    %114 = vector.extract_strided_slice %106 {offsets = [0, 96], sizes = [2, 32], strides = [1, 1]} : vector<2x128xf32> to vector<2x32xf32>
    %115 = arith.mulf %108, %95 : vector<2x32xf32>
    %116 = arith.mulf %107, %113 : vector<2x32xf32>
    %117 = arith.addf %115, %116 : vector<2x32xf32>
    %118 = math.tanh %117 : vector<2x32xf32>
    %119 = arith.mulf %114, %118 : vector<2x32xf32>
    %c0_37 = arith.constant 0 : index
    %c640 = arith.constant 640 : index
    %120 = vector.load %arg6[%c0_37, %c640] : memref<2x1024xf32, #tpu.memory_space<vmem>>, vector<2x128xf32>
    %121 = arith.truncf %119 : vector<2x32xf32> to vector<2x32xbf16>
    %cst_38 = arith.constant dense<0.000000e+00> : vector<2x128xf32>
    %122 = tpu.matmul %121, %0, %cst_38 {dimension_numbers = #tpu.dot_dimension_numbers<[1], [0], [0], [1], [0, 0, 1, 1], [], []>} : vector<2x32xbf16>, vector<32x128xbf16>, vector<2x128xf32> -> vector<2x128xf32>
    %123 = arith.addf %120, %122 : vector<2x128xf32>
    %124 = arith.negf %123 : vector<2x128xf32>
    %125 = math.exp %124 : vector<2x128xf32>
    %cst_39 = arith.constant 1.000000e+00 : f32
    %126 = vector.broadcast %cst_39 : f32 to vector<2x128xf32>
    %127 = arith.addf %126, %125 : vector<2x128xf32>
    %128 = arith.divf %126, %127 : vector<2x128xf32>
    %129 = vector.extract_strided_slice %128 {offsets = [0, 0], sizes = [2, 32], strides = [1, 1]} : vector<2x128xf32> to vector<2x32xf32>
    %130 = vector.extract_strided_slice %128 {offsets = [0, 32], sizes = [2, 32], strides = [1, 1]} : vector<2x128xf32> to vector<2x32xf32>
    %131 = vector.extract_strided_slice %128 {offsets = [0, 64], sizes = [2, 32], strides = [1, 1]} : vector<2x128xf32> to vector<2x32xf32>
    %cst_40 = arith.constant 2.000000e+00 : f32
    %132 = vector.broadcast %cst_40 : f32 to vector<2x32xf32>
    %133 = arith.mulf %132, %131 : vector<2x32xf32>
    %cst_41 = arith.constant 1.000000e+00 : f32
    %134 = vector.broadcast %cst_41 : f32 to vector<2x32xf32>
    %135 = arith.subf %133, %134 : vector<2x32xf32>
    %136 = vector.extract_strided_slice %128 {offsets = [0, 96], sizes = [2, 32], strides = [1, 1]} : vector<2x128xf32> to vector<2x32xf32>
    %137 = arith.mulf %130, %117 : vector<2x32xf32>
    %138 = arith.mulf %129, %135 : vector<2x32xf32>
    %139 = arith.addf %137, %138 : vector<2x32xf32>
    %140 = math.tanh %139 : vector<2x32xf32>
    %141 = arith.mulf %136, %140 : vector<2x32xf32>
    %c0_42 = arith.constant 0 : index
    %c768 = arith.constant 768 : index
    %142 = vector.load %arg6[%c0_42, %c768] : memref<2x1024xf32, #tpu.memory_space<vmem>>, vector<2x128xf32>
    %143 = arith.truncf %141 : vector<2x32xf32> to vector<2x32xbf16>
    %cst_43 = arith.constant dense<0.000000e+00> : vector<2x128xf32>
    %144 = tpu.matmul %143, %0, %cst_43 {dimension_numbers = #tpu.dot_dimension_numbers<[1], [0], [0], [1], [0, 0, 1, 1], [], []>} : vector<2x32xbf16>, vector<32x128xbf16>, vector<2x128xf32> -> vector<2x128xf32>
    %145 = arith.addf %142, %144 : vector<2x128xf32>
    %146 = arith.negf %145 : vector<2x128xf32>
    %147 = math.exp %146 : vector<2x128xf32>
    %cst_44 = arith.constant 1.000000e+00 : f32
    %148 = vector.broadcast %cst_44 : f32 to vector<2x128xf32>
    %149 = arith.addf %148, %147 : vector<2x128xf32>
    %150 = arith.divf %148, %149 : vector<2x128xf32>
    %151 = vector.extract_strided_slice %150 {offsets = [0, 0], sizes = [2, 32], strides = [1, 1]} : vector<2x128xf32> to vector<2x32xf32>
    %152 = vector.extract_strided_slice %150 {offsets = [0, 32], sizes = [2, 32], strides = [1, 1]} : vector<2x128xf32> to vector<2x32xf32>
    %153 = vector.extract_strided_slice %150 {offsets = [0, 64], sizes = [2, 32], strides = [1, 1]} : vector<2x128xf32> to vector<2x32xf32>
    %cst_45 = arith.constant 2.000000e+00 : f32
    %154 = vector.broadcast %cst_45 : f32 to vector<2x32xf32>
    %155 = arith.mulf %154, %153 : vector<2x32xf32>
    %cst_46 = arith.constant 1.000000e+00 : f32
    %156 = vector.broadcast %cst_46 : f32 to vector<2x32xf32>
    %157 = arith.subf %155, %156 : vector<2x32xf32>
    %158 = vector.extract_strided_slice %150 {offsets = [0, 96], sizes = [2, 32], strides = [1, 1]} : vector<2x128xf32> to vector<2x32xf32>
    %159 = arith.mulf %152, %139 : vector<2x32xf32>
    %160 = arith.mulf %151, %157 : vector<2x32xf32>
    %161 = arith.addf %159, %160 : vector<2x32xf32>
    %162 = math.tanh %161 : vector<2x32xf32>
    %163 = arith.mulf %158, %162 : vector<2x32xf32>
    %c0_47 = arith.constant 0 : index
    %c896 = arith.constant 896 : index
    %164 = vector.load %arg6[%c0_47, %c896] : memref<2x1024xf32, #tpu.memory_space<vmem>>, vector<2x128xf32>
    %165 = arith.truncf %163 : vector<2x32xf32> to vector<2x32xbf16>
    %cst_48 = arith.constant dense<0.000000e+00> : vector<2x128xf32>
    %166 = tpu.matmul %165, %0, %cst_48 {dimension_numbers = #tpu.dot_dimension_numbers<[1], [0], [0], [1], [0, 0, 1, 1], [], []>} : vector<2x32xbf16>, vector<32x128xbf16>, vector<2x128xf32> -> vector<2x128xf32>
    %167 = arith.addf %164, %166 : vector<2x128xf32>
    %168 = arith.negf %167 : vector<2x128xf32>
    %169 = math.exp %168 : vector<2x128xf32>
    %cst_49 = arith.constant 1.000000e+00 : f32
    %170 = vector.broadcast %cst_49 : f32 to vector<2x128xf32>
    %171 = arith.addf %170, %169 : vector<2x128xf32>
    %172 = arith.divf %170, %171 : vector<2x128xf32>
    %173 = vector.extract_strided_slice %172 {offsets = [0, 0], sizes = [2, 32], strides = [1, 1]} : vector<2x128xf32> to vector<2x32xf32>
    %174 = vector.extract_strided_slice %172 {offsets = [0, 32], sizes = [2, 32], strides = [1, 1]} : vector<2x128xf32> to vector<2x32xf32>
    %175 = vector.extract_strided_slice %172 {offsets = [0, 64], sizes = [2, 32], strides = [1, 1]} : vector<2x128xf32> to vector<2x32xf32>
    %cst_50 = arith.constant 2.000000e+00 : f32
    %176 = vector.broadcast %cst_50 : f32 to vector<2x32xf32>
    %177 = arith.mulf %176, %175 : vector<2x32xf32>
    %cst_51 = arith.constant 1.000000e+00 : f32
    %178 = vector.broadcast %cst_51 : f32 to vector<2x32xf32>
    %179 = arith.subf %177, %178 : vector<2x32xf32>
    %180 = vector.extract_strided_slice %172 {offsets = [0, 96], sizes = [2, 32], strides = [1, 1]} : vector<2x128xf32> to vector<2x32xf32>
    %181 = arith.mulf %174, %161 : vector<2x32xf32>
    %182 = arith.mulf %173, %179 : vector<2x32xf32>
    %183 = arith.addf %181, %182 : vector<2x32xf32>
    %184 = math.tanh %183 : vector<2x32xf32>
    %185 = arith.mulf %180, %184 : vector<2x32xf32>
    %c0_52 = arith.constant 0 : index
    %c0_53 = arith.constant 0 : index
    %186 = vector.load %arg5[%c0_52, %c0_53] : memref<2x32xf32, #tpu.memory_space<vmem>>, vector<2x32xf32>
    tpu.vector_store %arg5[%c0_52, %c0_53], %185 {strides = array<i32>} : memref<2x32xf32, #tpu.memory_space<vmem>>, vector<2x32xf32>,
    return
  }
  func.func @transform_0(%arg0: i32) -> (i32, i32) {
    %c0_i32 = arith.constant 0 : i32
    %c0_i32_0 = arith.constant 0 : i32
    return %arg0, %c0_i32 : i32, i32
  }
  func.func @transform_1(%arg0: i32) -> (i32, i32) {
    %c0_i32 = arith.constant 0 : i32
    %c0_i32_0 = arith.constant 0 : i32
    %c0_i32_1 = arith.constant 0 : i32
    return %c0_i32, %c0_i32_0 : i32, i32
  }
  func.func @transform_2(%arg0: i32) -> (i32, i32) {
    %c0_i32 = arith.constant 0 : i32
    %c0_i32_0 = arith.constant 0 : i32
    %c0_i32_1 = arith.constant 0 : i32
    return %c0_i32, %c0_i32_0 : i32, i32
  }
  func.func @transform_3(%arg0: i32) -> (i32, i32) {
    %c0_i32 = arith.constant 0 : i32
    %c0_i32_0 = arith.constant 0 : i32
    %c0_i32_1 = arith.constant 0 : i32
    return %c0_i32, %c0_i32_0 : i32, i32
  }
  func.func @transform_4(%arg0: i32) -> (i32, i32) {
    %c0_i32 = arith.constant 0 : i32
    %c0_i32_0 = arith.constant 0 : i32
    return %arg0, %c0_i32 : i32, i32
  }
}

</mosaic_0001>

<bundles_post_ra>
// kernel: tpu_custom_call.1
= control target key start
LH: loop header
LB: loop body
LE: loop exit
PB: predicated region body
PF: predicated region fallthrough
CT: control target
= control target key end

     0   :  { %9 = vsyncpa [#allocation4], 0  ;;  %s1779_s0 = inlined_call_operand.hbm [shape: bf16[2,128], index: 0, kind: input, shape index: {}]   ;;  %s1780_s1 = inlined_call_operand.hbm [shape: bf16[128,1024], index: 1, kind: input, shape index: {}]   ;;  %s1781_s2 = inlined_call_operand.hbm [shape: bf16[32,128], index: 2, kind: input, shape index: {}]   ;;  %s1782_s3 = inlined_call_operand.hbm [shape: f32[1,1024], index: 3, kind: input, shape index: {}]   ;;  %s1783_s4 = inlined_call_operand.hbm [shape: f32[2,32], index: 4, kind: output, shape index: {}]  }
   0x1   :  { %10 = vsyncpa [#allocation7], 0 }
   0x2   :  { %11 = vsyncpa [#allocation10], 0  ;;  %s28_s17 = sshll.u32 %s1780_s1, 4  ;;  %s29_s17 = int_to_ptr.hbm [resolvable:$true] %s28_s17 }
   0x3   :  { %12 = vsyncpa [#allocation5], 0  ;;  %s1671_s18 = smov [#allocation6]   ;;  %s18_s22 = sshll.u32 %s1779_s0, 4  ;;  %s19_s22 = int_to_ptr.hbm [resolvable:$true] %s18_s22 }
   0x4   :  { %s30_s19 = sshll.u32 %s1671_s18, 4  ;;  %s1672_s23 = smov 512   ;;  %s31_s19 = int_to_ptr.vmem [resolvable:$true] %s30_s19 }
   0x5   :  { %s1673_s24 = smov 32   ;;  %s1674_s25 = smov [#allocation3]  }
   0x6   :  { %36 = dma.hbm_to_vmem [thread:$0]  %s29_s17, 8192, %s31_s19, [#allocation7], %s1672_s23, %s1672_s23, %s1673_s24  }
   0x7   :  { %s20_s26 = sshll.u32 %s1674_s25, 4  ;;  %s41_s1 = sshll.u32 %s1781_s2, 4  ;;  %s21_s26 = int_to_ptr.vmem [resolvable:$true] %s20_s26  ;;  %s42_s1 = int_to_ptr.hbm [resolvable:$true] %s41_s1 }
   0x8   :  { %23 = dma.hbm_to_vmem [thread:$0]  %s19_s22, 16, %s21_s26, [#allocation4]  }
   0x9   :  { %s1675_s29 = smov [#allocation8]   ;;  %s55_s0 = sshll.u32 %s1782_s3, 4  ;;  %s56_s0 = int_to_ptr.hbm [resolvable:$true] %s55_s0 }
   0xa   :  { %s43_s30 = sshll.u32 %s1675_s29, 4  ;;  %s1676_s7 = smov 64   ;;  %s44_s30 = int_to_ptr.vmem [resolvable:$true] %s43_s30 }
   0xb   :  { %s1677_s8 = smov 4   ;;  %s1678_s9 = smov [#allocation9]  }
   0xc   :  { %49 = dma.hbm_to_vmem [thread:$0]  %s42_s1, 256, %s44_s30, [#allocation7], %s1676_s7, %s1676_s7, %s1677_s8  }
   0xd   :  { %s57_s10 = sshll.u32 %s1678_s9, 4  ;;  %s58_s10 = int_to_ptr.vmem [resolvable:$true] %s57_s10 }
   0xe   :  { %60 = dma.hbm_to_vmem [thread:$0]  %s56_s0, 128, %s58_s10, [#allocation10]  }
   0xf   :  { %1663 = dma.done.wait [#allocation4], 16  }
  0x10   :  { %1664 = vsyncadd [#allocation4], 4294967280 }
  0x11   :  { %1665 = dma.done.wait [#allocation7], 8448  }
  0x12   :  { %1666 = vsyncadd [#allocation7], 4294958848 }
  0x13   :  { %1667 = dma.done.wait [#allocation10], 128  }
  0x14   :  { %1668 = vsyncadd [#allocation10], 4294967168  ;;  %v1358_v0 = vld [vmem:[#allocation6 + $0x1c0] sm:$0xf]  ;;  %v1477_v2 = vld [vmem:[#allocation6 + $0x1c4] sm:$0xf] }
  0x15   :  { %v1481_v1 = vld [vmem:[#allocation6 + $0x1dc] sm:$0xf0]  ;;  %v1360_v4 = vld [vmem:[#allocation6 + $0x1e0] sm:$0xf0]  ;;  %v1366_v5 = vld [vmem:[#allocation6 + $0x1c8] sm:$0xf] }
  0x16   :  { %v1359_v3 = vor.u32 %v1481_v1, %v1358_v0  ;;  %v1482_v6 = vld [vmem:[#allocation6 + $0x1e4] sm:$0xf0]  ;;  %v1363_v7 = vor.u32 %v1477_v2, %v1360_v4  ;;  %v1478_v9 = vld [vmem:[#allocation6 + $0x1cc] sm:$0xf]  ;;  %v1326_v11 = vld [vmem:[#allocation6 + $0x180] sm:$0xf] }
  0x17   :  { %v1367_v8 = vor.u32 %v1482_v6, %v1366_v5  ;;  %v1368_v10 = vld [vmem:[#allocation6 + $0x1e8] sm:$0xf0]  ;;  %v1473_v13 = vld [vmem:[#allocation6 + $0x19c] sm:$0xf0]  ;;  %v1469_v14 = vld [vmem:[#allocation6 + $0x184] sm:$0xf] }
  0x18   :  { %485 = vmatpush.bf16.msra.mxu0 %v1359_v3  ;;  %v1371_v12 = vor.u32 %v1478_v9, %v1368_v10  ;;  %v1328_v15 = vld [vmem:[#allocation6 + $0x1a0] sm:$0xf0]  ;;  %498 = vmatpush.bf16.msra.mxu1 %v1363_v7  ;;  %v1327_v16 = vor.u32 %v1473_v13, %v1326_v11  ;;  %v1334_v18 = vld [vmem:[#allocation6 + $0x188] sm:$0xf]  ;;  %v1470_v20 = vld [vmem:[#allocation6 + $0x18c] sm:$0xf] }
  0x19   :  { %511 = vmatpush.bf16.msra.mxu2 %v1367_v8  ;;  %v1331_v17 = vor.u32 %v1469_v14, %v1328_v15  ;;  %v1474_v19 = vld [vmem:[#allocation6 + $0x1a4] sm:$0xf0]  ;;  %v1336_v22 = vld [vmem:[#allocation6 + $0x1a8] sm:$0xf0]  ;;  %v1294_v23 = vld [vmem:[#allocation6 + $0x140] sm:$0xf] }
  0x1a   :  { %524 = vmatpush.bf16.msra.mxu3 %v1371_v12  ;;  %v1335_v21 = vor.u32 %v1474_v19, %v1334_v18  ;;  %v1465_v24 = vld [vmem:[#allocation6 + $0x15c] sm:$0xf0]  ;;  %v1339_v25 = vor.u32 %v1470_v20, %v1336_v22  ;;  %v1461_v26 = vld [vmem:[#allocation6 + $0x144] sm:$0xf]  ;;  %v1302_v28 = vld [vmem:[#allocation6 + $0x148] sm:$0xf] }
  0x1b   :  { %v1296_v27 = vld [vmem:[#allocation6 + $0x160] sm:$0xf0]  ;;  %v1295_v29 = vor.u32 %v1465_v24, %v1294_v23  ;;  %v1466_v30 = vld [vmem:[#allocation6 + $0x164] sm:$0xf0]  ;;  %v1462_v31 = vld [vmem:[#allocation6 + $0x14c] sm:$0xf] }
  0x1c   :  { %486 = vmatpush.bf16.msra.mxu0 %v1327_v16  ;;  %v1304_v32 = vld [vmem:[#allocation6 + $0x168] sm:$0xf0]  ;;  %499 = vmatpush.bf16.msra.mxu1 %v1331_v17  ;;  %v1299_v33 = vor.u32 %v1461_v26, %v1296_v27  ;;  %v1303_v34 = vor.u32 %v1466_v30, %v1302_v28  ;;  %v1262_v35 = vld [vmem:[#allocation6 + $0x100] sm:$0xf]  ;;  %v1453_v37 = vld [vmem:[#allocation6 + $0x104] sm:$0xf] }
  0x1d   :  { %512 = vmatpush.bf16.msra.mxu2 %v1335_v21  ;;  %v1457_v36 = vld [vmem:[#allocation6 + $0x11c] sm:$0xf0]  ;;  %v1307_v38 = vor.u32 %v1462_v31, %v1304_v32  ;;  %v1264_v39 = vld [vmem:[#allocation6 + $0x120] sm:$0xf0]  ;;  %v1270_v40 = vld [vmem:[#allocation6 + $0x108] sm:$0xf] }
  0x1e   :  { %525 = vmatpush.bf16.msra.mxu3 %v1339_v25  ;;  %v1458_v41 = vld [vmem:[#allocation6 + $0x124] sm:$0xf0]  ;;  %v1454_v42 = vld [vmem:[#allocation6 + $0x10c] sm:$0xf]  ;;  %v1263_v44 = vor.u32 %v1457_v36, %v1262_v35  ;;  %v1267_v45 = vor.u32 %v1453_v37, %v1264_v39  ;;  %v1230_v47 = vld [vmem:[#allocation6 + $0xc0] sm:$0xf] }
  0x1f   :  { %v1272_v43 = vld [vmem:[#allocation6 + $0x128] sm:$0xf0]  ;;  %v1271_v46 = vor.u32 %v1458_v41, %v1270_v40  ;;  %v1449_v48 = vld [vmem:[#allocation6 + $0xdc] sm:$0xf0]  ;;  %v1445_v49 = vld [vmem:[#allocation6 + $0xc4] sm:$0xf] }
  0x20   :  { %487 = vmatpush.bf16.msra.mxu0 %v1295_v29  ;;  %500 = vmatpush.bf16.msra.mxu1 %v1299_v33  ;;  %v1275_v50 = vor.u32 %v1454_v42, %v1272_v43  ;;  %v1232_v51 = vld [vmem:[#allocation6 + $0xe0] sm:$0xf0]  ;;  %v1238_v52 = vld [vmem:[#allocation6 + $0xc8] sm:$0xf]  ;;  %v1446_v54 = vld [vmem:[#allocation6 + $0xcc] sm:$0xf]  ;;  %v1231_v56 = vor.u32 %v1449_v48, %v1230_v47 }
  0x21   :  { %513 = vmatpush.bf16.msra.mxu2 %v1303_v34  ;;  %v1450_v53 = vld [vmem:[#allocation6 + $0xe4] sm:$0xf0]  ;;  %v1240_v55 = vld [vmem:[#allocation6 + $0xe8] sm:$0xf0]  ;;  %v1235_v57 = vor.u32 %v1445_v49, %v1232_v51  ;;  %v1198_v59 = vld [vmem:[#allocation6 + $0x80] sm:$0xf] }
  0x22   :  { %526 = vmatpush.bf16.msra.mxu3 %v1307_v38  ;;  %v1239_v58 = vor.u32 %v1450_v53, %v1238_v52  ;;  %v1441_v60 = vld [vmem:[#allocation6 + $0x9c] sm:$0xf0]  ;;  %v1437_v61 = vld [vmem:[#allocation6 + $0x84] sm:$0xf]  ;;  %v1243_v62 = vor.u32 %v1446_v54, %v1240_v55  ;;  %v1206_v0 = vld [vmem:[#allocation6 + $0x88] sm:$0xf] }
  0x23   :  { %v1200_v63 = vld [vmem:[#allocation6 + $0xa0] sm:$0xf0]  ;;  %v1442_v1 = vld [vmem:[#allocation6 + $0xa4] sm:$0xf0]  ;;  %v1438_v2 = vld [vmem:[#allocation6 + $0x8c] sm:$0xf]  ;;  %v1199_v4 = vor.u32 %v1441_v60, %v1198_v59 }
  0x24   :  { %488 = vmatpush.bf16.msra.mxu0 %v1263_v44  ;;  %501 = vmatpush.bf16.msra.mxu1 %v1267_v45  ;;  %v1208_v3 = vld [vmem:[#allocation6 + $0xa8] sm:$0xf0]  ;;  %v1203_v5 = vor.u32 %v1437_v61, %v1200_v63  ;;  %v1207_v6 = vor.u32 %v1442_v1, %v1206_v0  ;;  %v1166_v7 = vld [vmem:[#allocation6 + $0x40] sm:$0xf]  ;;  %v1429_v9 = vld [vmem:[#allocation6 + $0x44] sm:$0xf] }
  0x25   :  { %514 = vmatpush.bf16.msra.mxu2 %v1271_v46  ;;  %v1433_v8 = vld [vmem:[#allocation6 + $0x5c] sm:$0xf0]  ;;  %v1211_v10 = vor.u32 %v1438_v2, %v1208_v3  ;;  %v1168_v11 = vld [vmem:[#allocation6 + $0x60] sm:$0xf0]  ;;  %v1174_v12 = vld [vmem:[#allocation6 + $0x48] sm:$0xf] }
  0x26   :  { %527 = vmatpush.bf16.msra.mxu3 %v1275_v50  ;;  %v1434_v13 = vld [vmem:[#allocation6 + $0x64] sm:$0xf0]  ;;  %v1430_v14 = vld [vmem:[#allocation6 + $0x4c] sm:$0xf]  ;;  %v1167_v16 = vor.u32 %v1433_v8, %v1166_v7  ;;  %v1134_v17 = vld [vmem:[#allocation6] sm:$0xf]  ;;  %v1171_v19 = vor.u32 %v1429_v9, %v1168_v11 }
  0x27   :  { %v1176_v15 = vld [vmem:[#allocation6 + $0x68] sm:$0xf0]  ;;  %v1425_v18 = vld [vmem:[#allocation6 + $0x1c] sm:$0xf0]  ;;  %v1175_v20 = vor.u32 %v1434_v13, %v1174_v12  ;;  %v1421_v21 = vld [vmem:[#allocation6 + $0x4] sm:$0xf] }
  0x28   :  { %489 = vmatpush.bf16.msra.mxu0 %v1231_v56  ;;  %502 = vmatpush.bf16.msra.mxu1 %v1235_v57  ;;  %v1136_v22 = vld [vmem:[#allocation6 + $0x20] sm:$0xf0]  ;;  %v1142_v23 = vld [vmem:[#allocation6 + $0x8] sm:$0xf]  ;;  %v1179_v24 = vor.u32 %v1430_v14, %v1176_v15  ;;  %v1422_v26 = vld [vmem:[#allocation6 + $0xc] sm:$0xf]  ;;  %v1135_v31 = vor.u32 %v1425_v18, %v1134_v17 }
  0x29   :  { %515 = vmatpush.bf16.msra.mxu2 %v1239_v58  ;;  %v1426_v25 = vld [vmem:[#allocation6 + $0x24] sm:$0xf0]  ;;  %v1144_v27 = vld [vmem:[#allocation6 + $0x28] sm:$0xf0]  ;;  %v1374_v28 = vld [vmem:[#allocation6 + $0x1d0] sm:$0xf]  ;;  %v1139_v35 = vor.u32 %v1421_v21, %v1136_v22 }
  0x2a   :  { %528 = vmatpush.bf16.msra.mxu3 %v1243_v62  ;;  %v1483_v29 = vld [vmem:[#allocation6 + $0x1ec] sm:$0xf0]  ;;  %v1479_v30 = vld [vmem:[#allocation6 + $0x1d4] sm:$0xf]  ;;  %v1382_v33 = vld [vmem:[#allocation6 + $0x1d8] sm:$0xf]  ;;  %v1143_v36 = vor.u32 %v1426_v25, %v1142_v23  ;;  %v1147_v39 = vor.u32 %v1422_v26, %v1144_v27 }
  0x2b   :  { %v1376_v32 = vld [vmem:[#allocation6 + $0x1f0] sm:$0xf0]  ;;  %v1484_v34 = vld [vmem:[#allocation6 + $0x1f4] sm:$0xf0]  ;;  %v1480_v37 = vld [vmem:[#allocation6 + $0x1dc] sm:$0xf]  ;;  %v1375_v40 = vor.u32 %v1483_v29, %v1374_v28 }
  0x2c   :  { %490 = vmatpush.bf16.msra.mxu0 %v1199_v4  ;;  %503 = vmatpush.bf16.msra.mxu1 %v1203_v5  ;;  %v1384_v38 = vld [vmem:[#allocation6 + $0x1f8] sm:$0xf0]  ;;  %v1379_v41 = vor.u32 %v1479_v30, %v1376_v32  ;;  %v1383_v42 = vor.u32 %v1484_v34, %v1382_v33  ;;  %v1342_v43 = vld [vmem:[#allocation6 + $0x190] sm:$0xf]  ;;  %v1471_v45 = vld [vmem:[#allocation6 + $0x194] sm:$0xf] }
  0x2d   :  { %516 = vmatpush.bf16.msra.mxu2 %v1207_v6  ;;  %v1475_v44 = vld [vmem:[#allocation6 + $0x1ac] sm:$0xf0]  ;;  %v1387_v46 = vor.u32 %v1480_v37, %v1384_v38  ;;  %v1344_v47 = vld [vmem:[#allocation6 + $0x1b0] sm:$0xf0]  ;;  %v1350_v48 = vld [vmem:[#allocation6 + $0x198] sm:$0xf] }
  0x2e   :  { %529 = vmatpush.bf16.msra.mxu3 %v1211_v10  ;;  %v1476_v49 = vld [vmem:[#allocation6 + $0x1b4] sm:$0xf0]  ;;  %v1472_v50 = vld [vmem:[#allocation6 + $0x19c] sm:$0xf]  ;;  %v1343_v53 = vor.u32 %v1475_v44, %v1342_v43  ;;  %v1347_v54 = vor.u32 %v1471_v45, %v1344_v47  ;;  %v1310_v56 = vld [vmem:[#allocation6 + $0x150] sm:$0xf] }
  0x2f   :  { %v1352_v51 = vld [vmem:[#allocation6 + $0x1b8] sm:$0xf0]  ;;  %v1351_v55 = vor.u32 %v1476_v49, %v1350_v48  ;;  %v1467_v57 = vld [vmem:[#allocation6 + $0x16c] sm:$0xf0]  ;;  %v1463_v58 = vld [vmem:[#allocation6 + $0x154] sm:$0xf] }
  0x30   :  { %491 = vmatpush.bf16.msra.mxu0 %v1167_v16  ;;  %504 = vmatpush.bf16.msra.mxu1 %v1171_v19  ;;  %v1721_v52 = vld [vmem:[#allocation3] sm:$0x1]  ;;  %v1355_v59 = vor.u32 %v1472_v50, %v1352_v51  ;;  %v1312_v60 = vld [vmem:[#allocation6 + $0x170] sm:$0xf0]  ;;  %v1318_v61 = vld [vmem:[#allocation6 + $0x158] sm:$0xf]  ;;  %v1311_v1 = vor.u32 %v1467_v57, %v1310_v56 }
  0x31   :  { %517 = vmatpush.bf16.msra.mxu2 %v1175_v20  ;;  %v1468_v62 = vld [vmem:[#allocation6 + $0x174] sm:$0xf0]  ;;  %v1464_v63 = vld [vmem:[#allocation6 + $0x15c] sm:$0xf]  ;;  %v1315_v2 = vor.u32 %v1463_v58, %v1312_v60  ;;  %v1278_v4 = vld [vmem:[#allocation6 + $0x110] sm:$0xf] }
  0x32   :  { %530 = vmatpush.bf16.msra.mxu3 %v1179_v24  ;;  %v1320_v0 = vld [vmem:[#allocation6 + $0x178] sm:$0xf0]  ;;  %v1319_v3 = vor.u32 %v1468_v62, %v1318_v61  ;;  %v1459_v5 = vld [vmem:[#allocation6 + $0x12c] sm:$0xf0]  ;;  %v1455_v6 = vld [vmem:[#allocation6 + $0x114] sm:$0xf] }
  0x33   :  { %v1323_v7 = vor.u32 %v1464_v63, %v1320_v0  ;;  %v1280_v8 = vld [vmem:[#allocation6 + $0x130] sm:$0xf0]  ;;  %v1286_v9 = vld [vmem:[#allocation6 + $0x118] sm:$0xf]  ;;  %v1456_v11 = vld [vmem:[#allocation6 + $0x11c] sm:$0xf]  ;;  %v1279_v13 = vor.u32 %v1459_v5, %v1278_v4 }
  0x34   :  { %492 = vmatpush.bf16.msra.mxu0 %v1135_v31  ;;  %505 = vmatpush.bf16.msra.mxu1 %v1139_v35  ;;  %v1460_v10 = vld [vmem:[#allocation6 + $0x134] sm:$0xf0]  ;;  %v1288_v12 = vld [vmem:[#allocation6 + $0x138] sm:$0xf0]  ;;  %v1283_v14 = vor.u32 %v1455_v6, %v1280_v8  ;;  %v1246_v16 = vld [vmem:[#allocation6 + $0xd0] sm:$0xf] }
  0x35   :  { %518 = vmatpush.bf16.msra.mxu2 %v1143_v36  ;;  %v1287_v15 = vor.u32 %v1460_v10, %v1286_v9  ;;  %v1451_v17 = vld [vmem:[#allocation6 + $0xec] sm:$0xf0]  ;;  %v1447_v18 = vld [vmem:[#allocation6 + $0xd4] sm:$0xf]  ;;  %v1291_v19 = vor.u32 %v1456_v11, %v1288_v12  ;;  %v1254_v21 = vld [vmem:[#allocation6 + $0xd8] sm:$0xf] }
  0x36   :  { %531 = vmatpush.bf16.msra.mxu3 %v1147_v39  ;;  %v1248_v20 = vld [vmem:[#allocation6 + $0xf0] sm:$0xf0]  ;;  %v1452_v22 = vld [vmem:[#allocation6 + $0xf4] sm:$0xf0]  ;;  %v1448_v23 = vld [vmem:[#allocation6 + $0xdc] sm:$0xf]  ;;  %v1247_v25 = vor.u32 %v1451_v17, %v1246_v16 }
  0x37   :  { %493 = vmatmul.bf16.vlgmr.msra.gmra.mxu0 %v1721_v52  ;;  %506 = vmatmul.bf16.vlgmr.msra.gmra.mxu1 %v1721_v52  ;;  %v1256_v24 = vld [vmem:[#allocation6 + $0xf8] sm:$0xf0]  ;;  %v1251_v26 = vor.u32 %v1447_v18, %v1248_v20  ;;  %v1255_v27 = vor.u32 %v1452_v22, %v1254_v21  ;;  %v1214_v28 = vld [vmem:[#allocation6 + $0x90] sm:$0xf]  ;;  %v1439_v30 = vld [vmem:[#allocation6 + $0x94] sm:$0xf] }
  0x38   :  { %537 = vmatpush.bf16.msrb.mxu0 %v1375_v40  ;;  %550 = vmatpush.bf16.msrb.mxu1 %v1379_v41  ;;  %v1443_v29 = vld [vmem:[#allocation6 + $0xac] sm:$0xf0]  ;;  %v1259_v31 = vor.u32 %v1448_v23, %v1256_v24  ;;  %v1216_v32 = vld [vmem:[#allocation6 + $0xb0] sm:$0xf0]  ;;  %v1222_v33 = vld [vmem:[#allocation6 + $0x98] sm:$0xf] }
  0x39   :  { %563 = vmatpush.bf16.msrb.mxu2 %v1383_v42  ;;  %532 = vmatmul.bf16.vlgmr.msra.gmra.mxu3 %v1721_v52  ;;  %v1444_v34 = vld [vmem:[#allocation6 + $0xb4] sm:$0xf0]  ;;  %v1440_v35 = vld [vmem:[#allocation6 + $0x9c] sm:$0xf]  ;;  %v1215_v37 = vor.u32 %v1443_v29, %v1214_v28  ;;  %v1219_v38 = vor.u32 %v1439_v30, %v1216_v32  ;;  %v1182_v40 = vld [vmem:[#allocation6 + $0x50] sm:$0xf] }
  0x3a   :  { %576 = vmatpush.bf16.msrb.mxu3 %v1387_v46  ;;  %519 = vmatmul.bf16.vlgmr.msra.gmra.mxu2 %v1721_v52  ;;  %v1224_v36 = vld [vmem:[#allocation6 + $0xb8] sm:$0xf0]  ;;  %v1223_v39 = vor.u32 %v1444_v34, %v1222_v33  ;;  %v1435_v41 = vld [vmem:[#allocation6 + $0x6c] sm:$0xf0]  ;;  %v1431_v42 = vld [vmem:[#allocation6 + $0x54] sm:$0xf] }
  0x3b   :  { %v1227_v43 = vor.u32 %v1440_v35, %v1224_v36  ;;  %v1184_v44 = vld [vmem:[#allocation6 + $0x70] sm:$0xf0]  ;;  %v1190_v45 = vld [vmem:[#allocation6 + $0x58] sm:$0xf]  ;;  %v1432_v47 = vld [vmem:[#allocation6 + $0x5c] sm:$0xf]  ;;  %v1183_v49 = vor.u32 %v1435_v41, %v1182_v40 }
  0x3c   :  { %538 = vmatpush.bf16.msrb.mxu0 %v1343_v53  ;;  %551 = vmatpush.bf16.msrb.mxu1 %v1347_v54  ;;  %v1436_v46 = vld [vmem:[#allocation6 + $0x74] sm:$0xf0]  ;;  %v1192_v48 = vld [vmem:[#allocation6 + $0x78] sm:$0xf0]  ;;  %v1187_v50 = vor.u32 %v1431_v42, %v1184_v44  ;;  %v1150_v53 = vld [vmem:[#allocation6 + $0x10] sm:$0xf] }
  0x3d   :  { %564 = vmatpush.bf16.msrb.mxu2 %v1351_v55  ;;  %v1191_v51 = vor.u32 %v1436_v46, %v1190_v45  ;;  %v1427_v54 = vld [vmem:[#allocation6 + $0x2c] sm:$0xf0]  ;;  %v1423_v55 = vld [vmem:[#allocation6 + $0x14] sm:$0xf]  ;;  %v1195_v56 = vor.u32 %v1432_v47, %v1192_v48  ;;  %v1158_v58 = vld [vmem:[#allocation6 + $0x18] sm:$0xf] }
  0x3e   :  { %577 = vmatpush.bf16.msrb.mxu3 %v1355_v59  ;;  %v1152_v57 = vld [vmem:[#allocation6 + $0x30] sm:$0xf0]  ;;  %v1428_v59 = vld [vmem:[#allocation6 + $0x34] sm:$0xf0]  ;;  %v1424_v60 = vld [vmem:[#allocation6 + $0x1c] sm:$0xf]  ;;  %v1151_v62 = vor.u32 %v1427_v54, %v1150_v53 }
  0x3f   :  { %v1160_v61 = vld [vmem:[#allocation6 + $0x38] sm:$0xf0]  ;;  %v1155_v63 = vor.u32 %v1423_v55, %v1152_v57  ;;  %v1159_v0 = vor.u32 %v1428_v59, %v1158_v58  ;;  %v1679_v4 = vmov 0   ;;  %v147_v5 = vld [vmem:[#allocation9] sm:$0xff]  ;;  %vm603_vm0 = vcmask 1041408   ;;  %s1680_s2 = smov [#allocation11]  }
  0x40   :  { %539 = vmatpush.bf16.msrb.mxu0 %v1311_v1  ;;  %552 = vmatpush.bf16.msrb.mxu1 %v1315_v2  ;;  %v1163_v1 = vor.u32 %v1424_v60, %v1160_v61  ;;  %v1420_v2 = vld [vmem:[#allocation8 + $0x8] sm:$0xff]  ;;  %v150_v6 = vperm.slane %v147_v5, 1  ;;  %v151_v10 = vperm.slane %v147_v5, 2  ;;  %v152_v11 = vperm.slane %v147_v5, 3  ;;  %s1118_s3 = sshll.u32 %s1680_s2, 4  ;;  %s1120_s13 = sshll.u32 %s1783_s4, 4  ;;  %s1119_s3 = int_to_ptr.vmem [resolvable:$true] %s1118_s3  ;;  %s1121_s13 = int_to_ptr.hbm [resolvable:$true] %s1120_s13 }
  0x41   :  { %565 = vmatpush.bf16.msrb.mxu2 %v1319_v3  ;;  %v1419_v3 = vld [vmem:[#allocation8] sm:$0xff]  ;;  %vm605_vm1 = vcmask 1045508   ;;  %vm607_vm2 = vcmask 1043456   ;;  %v154_v28 = vperm.slane %v147_v5, 5  ;;  %v155_v30 = vperm.slane %v147_v5, 6 }
  0x42   :  { %578 = vmatpush.bf16.msrb.mxu3 %v1323_v7  ;;  %v156_v32 = vperm.slane %v147_v5, 7  ;;  %v153_v33 = vperm.slane %v147_v5, 4  ;;  %vm629_vm7 = vcmask 261120  }
  0x44   :  { %540 = vmatpush.bf16.msrb.mxu0 %v1279_v13  ;;  %553 = vmatpush.bf16.msrb.mxu1 %v1283_v14 }
  0x45   :  { %566 = vmatpush.bf16.msrb.mxu2 %v1287_v15 }
  0x46   :  { %579 = vmatpush.bf16.msrb.mxu3 %v1291_v19 }
  0x48   :  { %541 = vmatpush.bf16.msrb.mxu0 %v1247_v25  ;;  %554 = vmatpush.bf16.msrb.mxu1 %v1251_v26 }
  0x49   :  { %567 = vmatpush.bf16.msrb.mxu2 %v1255_v27 }
  0x4a   :  { %580 = vmatpush.bf16.msrb.mxu3 %v1259_v31 }
  0x4c   :  { %542 = vmatpush.bf16.msrb.mxu0 %v1215_v37  ;;  %555 = vmatpush.bf16.msrb.mxu1 %v1219_v38 }
  0x4d   :  { %568 = vmatpush.bf16.msrb.mxu2 %v1223_v39 }
  0x4e   :  { %581 = vmatpush.bf16.msrb.mxu3 %v1227_v43 }
  0x50   :  { %543 = vmatpush.bf16.msrb.mxu0 %v1183_v49  ;;  %556 = vmatpush.bf16.msrb.mxu1 %v1187_v50 }
  0x51   :  { %569 = vmatpush.bf16.msrb.mxu2 %v1191_v51 }
  0x52   :  { %582 = vmatpush.bf16.msrb.mxu3 %v1195_v56 }
  0x54   :  { %544 = vmatpush.bf16.msrb.mxu0 %v1151_v62  ;;  %557 = vmatpush.bf16.msrb.mxu1 %v1155_v63 }
  0x55   :  { %570 = vmatpush.bf16.msrb.mxu2 %v1159_v0 }
  0x56   :  { %583 = vmatpush.bf16.msrb.mxu3 %v1163_v1 }
  0x57   :  { %545 = vmatmul.bf16.vlgmr.msrb.gmra.mxu0 %v1721_v52  ;;  %558 = vmatmul.bf16.vlgmr.msrb.gmra.mxu1 %v1721_v52 }
  0x58   :  { %639 = vmatpush.bf16.msra.mxu0 %v1420_v2  ;;  %699 = vmatpush.bf16.msra.mxu1 %v1420_v2 }
  0x59   :  { %571 = vmatmul.bf16.vlgmr.msrb.gmra.mxu2 %v1721_v52  ;;  %584 = vmatmul.bf16.vlgmr.msrb.gmra.mxu3 %v1721_v52  ;;  %v149_v52 = vperm.slane %v147_v5, 0 }
  0x5a   :  { %759 = vmatpush.bf16.msra.mxu2 %v1420_v2  ;;  %819 = vmatpush.bf16.msra.mxu3 %v1420_v2 }
  0x5c   :  { %640 = vmatpush.bf16.msra.mxu0 %v1419_v3  ;;  %700 = vmatpush.bf16.msra.mxu1 %v1419_v3 }
  0x5e   :  { %760 = vmatpush.bf16.msra.mxu2 %v1419_v3  ;;  %820 = vmatpush.bf16.msra.mxu3 %v1419_v3 }
  0x60   :  { %879 = vmatpush.bf16.msrb.mxu0 %v1420_v2  ;;  %939 = vmatpush.bf16.msrb.mxu1 %v1420_v2 }
  0x62   :  { %999 = vmatpush.bf16.msrb.mxu2 %v1420_v2  ;;  %1059 = vmatpush.bf16.msrb.mxu3 %v1420_v2 }
  0x64   :  { %880 = vmatpush.bf16.msrb.mxu0 %v1419_v3  ;;  %940 = vmatpush.bf16.msrb.mxu1 %v1419_v3 }
  0x66   :  { %1000 = vmatpush.bf16.msrb.mxu2 %v1419_v3  ;;  %1060 = vmatpush.bf16.msrb.mxu3 %v1419_v3 }
  0x67   :  { %641 = vmatmul.bf16.vlgmr.msra.gmra.mxu0 %v1679_v4 }
  0xb4   :  { %v494_v7 = vpop.f32.mrf.mxu0  ;;  %v507_v8 = vpop.f32.mrf.mxu1 }
  0xb5   :  { %v508_v9 = vadd.f32 %v507_v8, %v150_v6  ;;  %v495_v12 = vadd.f32 %v494_v7, %v149_v52 }
  0xb7   :  { %v597_v13 = vrot.slane %v508_v9, 6 }
  0xb9   :  { %v604_v19 = vsel %vm603_vm0, %v495_v12, %v597_v13 }
  0xbc   :  { %v533_v15 = vpop.f32.mrf.mxu3  ;;  %v496_v18 = vpop.f32.mrf.mxu0 }
  0xbd   :  { %v520_v14 = vpop.f32.mrf.mxu2  ;;  %v534_v17 = vadd.f32 %v533_v15, %v152_v11  ;;  %v509_v22 = vpop.f32.mrf.mxu1 }
  0xbe   :  { %v521_v16 = vadd.f32 %v520_v14, %v151_v10 }
  0xbf   :  { %v599_v21 = vrot.slane %v534_v17, 2 }
  0xc0   :  { %v598_v20 = vrot.slane %v521_v16, 4 }
  0xc2   :  { %v606_v23 = vsel %vm605_vm1, %v598_v20, %v599_v21 }
  0xc3   :  { %v608_v24 = vsel %vm607_vm2, %v604_v19, %v606_v23 }
  0xc4   :  { %614 = vst [vmem:[#allocation2] sm:$0xff] %v608_v24  ;;  %v535_v26 = vpop.f32.mrf.mxu3 }
  0xc5   :  { %v522_v25 = vpop.f32.mrf.mxu2 }
  0xcb   :  { %v616_v48 = vld [vmem:[#allocation2] sm:$0x3]  ;;  %v685_v14 = vld [vmem:[#allocation2 + $0x2] sm:$0x3] }
  0xd4   :  { %v546_v27 = vpop.f32.mrf.mxu0  ;;  %v559_v29 = vpop.f32.mrf.mxu1 }
  0xd5   :  { %v560_v31 = vadd.f32 %v559_v29, %v154_v28  ;;  %v547_v42 = vadd.f32 %v546_v27, %v153_v33 }
  0xd7   :  { %v600_v38 = vrot.slane %v560_v31, 6 }
  0xd9   :  { %v609_v44 = vsel %vm603_vm0, %v547_v42, %v600_v38 }
  0xdc   :  { %v572_v34 = vpop.f32.mrf.mxu2  ;;  %v585_v36 = vpop.f32.mrf.mxu3 }
  0xdd   :  { %v573_v35 = vadd.f32 %v572_v34, %v155_v30  ;;  %v548_v37 = vpop.f32.mrf.mxu0  ;;  %v586_v39 = vadd.f32 %v585_v36, %v156_v32  ;;  %v561_v40 = vpop.f32.mrf.mxu1 }
  0xdf   :  { %v601_v41 = vrot.slane %v573_v35, 4  ;;  %v602_v43 = vrot.slane %v586_v39, 2 }
  0xe1   :  { %v610_v45 = vsel %vm605_vm1, %v601_v41, %v602_v43  ;;  %v745_v43 = vld [vmem:[#allocation2 + $0x4] sm:$0x3] }
  0xe2   :  { %v611_v46 = vsel %vm607_vm2, %v609_v44, %v610_v45 }
  0xe3   :  { %615 = vst [vmem:[#allocation2 + $0x8] sm:$0xff] %v611_v46 }
  0xe4   :  { %v574_v47 = vpop.f32.mrf.mxu2  ;;  %v587_v50 = vpop.f32.mrf.mxu3 }
  0xe5   :  { %v642_v49 = vpop.f32.mrf.mxu0 }
  0xe6   :  { %v646_v51 = vadd.f32 %v642_v49, %v616_v48 }
  0xe8   :  { %v1396_v53 = vmul.f32 -1.442695, %v646_v51 }
  0xea   :  { %1495 = vpow2.f32 %v1396_v53 }
  0xed   :  { %v644_v54 = vpop.f32.mrf.mxu0 }
  0xf0   :  { %v1496_v55 = vpop.eup %1495 }
  0xf1   :  { %v650_v56 = vadd.f32 1.0, %v1496_v55 }
  0xf3   :  { %1497 = vrcp.f32 %v650_v56  ;;  %v662_v60 = vand.u32 2147483648, %v650_v56  ;;  %v660_v62 = vand.u32 2147483647, %v650_v56  ;;  %vm656_vm4 = vweird.f32 %v650_v56 }
  0xf5   :  { %v663_v0 = vor.u32 1.1754944e-38, %v662_v60  ;;  %vm661_vm6 = vcmp.eq.f32.partialorder %v660_v62, 8.507059e+37 }
  0xf9   :  { %v1498_v57 = vpop.eup %1497 }
  0xfa   :  { %v652_v58 = vmul.f32 %v1498_v57, %v650_v56  ;;  %vm657_vm3 = vweird.f32 %v1498_v57 }
  0xfb   :  { %vm658_vm5 = vmor %vm656_vm4, %vm657_vm3 }
  0xfc   :  { %v653_v59 = vsub.f32 1.0, %v652_v58 }
  0xfe   :  { %v654_v61 = vmul.f32 %v1498_v57, %v653_v59 }
 0x100   :  { %v655_v63 = vadd.f32 %v1498_v57, %v654_v61 }
 0x102   :  { %v659_v1 = vsel %vm658_vm5, %v1498_v57, %v655_v63 }
 0x103   :  { %v664_v2 = vsel %vm661_vm6, %v663_v0, %v659_v1 }
 0x104   :  { %v666_v3 = vmul.f32 2.0, %v664_v2  ;;  %v668_v7 = vmul.f32 0.0, %v664_v2 }
 0x106   :  { %v1397_v4 = vadd.f32 -1.0, %v666_v3 }
 0x108   :  { %670 = vrot.lane.b32.xlu0 %v1397_v4, %s1676_s7 }
 0x17a   :  { %v671_v5 = vpop.permute.xlu0 %670 }
 0x17b   :  { %v673_v6 = vmul.f32 %v671_v5, %v664_v2 }
 0x17d   :  { %675 = vrot.lane.b32.xlu0 %v673_v6, %s1673_s24 }
 0x1ef   :  { %v676_v52 = vpop.permute.xlu0 %675 }
 0x1f0   :  { %v678_v8 = vadd.f32 %v676_v52, %v668_v7 }
 0x1f2   :  { %1499 = vtanh.f32 %v678_v8 }
 0x1f8   :  { %v1500_v9 = vpop.eup %1499 }
 0x1f9   :  { %681 = vrot.lane.b32.xlu1 %v1500_v9, %s1676_s7 }
 0x26b   :  { %v682_v10 = vpop.permute.xlu1 %681 }
 0x26c   :  { %v684_v11 = vmul.f32 %v682_v10, %v664_v2 }
 0x26e   :  { %v686_v12 = vpack.c.bf16 %v684_v11, %v684_v11 }
 0x270   :  { %688 = vrot.lane.b32.xlu1 %v686_v12, %s1673_s24 }
 0x2e2   :  { %v689_v13 = vpop.permute.xlu1 %688 }
 0x2e3   :  { %1398 = vmatmul.msk.bf16.vlgmr.msra.gmra.mxu1 %vm629_vm7, %v689_v13 }
 0x360   :  { %v702_v15 = vpop.f32.mrf.mxu1 }
 0x361   :  { %v706_v16 = vadd.f32 %v702_v15, %v685_v14 }
 0x363   :  { %v1399_v17 = vmul.f32 -1.442695, %v706_v16 }
 0x365   :  { %1501 = vpow2.f32 %v1399_v17 }
 0x368   :  { %v704_v18 = vpop.f32.mrf.mxu1 }
 0x36b   :  { %v1502_v19 = vpop.eup %1501 }
 0x36c   :  { %v710_v20 = vadd.f32 1.0, %v1502_v19 }
 0x36e   :  { %1503 = vrcp.f32 %v710_v20  ;;  %v722_v24 = vand.u32 2147483648, %v710_v20  ;;  %v720_v26 = vand.u32 2147483647, %v710_v20  ;;  %vm716_vm9 = vweird.f32 %v710_v20 }
 0x370   :  { %v723_v28 = vor.u32 1.1754944e-38, %v722_v24  ;;  %vm721_vm11 = vcmp.eq.f32.partialorder %v720_v26, 8.507059e+37 }
 0x374   :  { %v1504_v21 = vpop.eup %1503 }
 0x375   :  { %v712_v22 = vmul.f32 %v1504_v21, %v710_v20  ;;  %vm717_vm8 = vweird.f32 %v1504_v21 }
 0x376   :  { %vm718_vm10 = vmor %vm716_vm9, %vm717_vm8 }
 0x377   :  { %v713_v23 = vsub.f32 1.0, %v712_v22 }
 0x379   :  { %v714_v25 = vmul.f32 %v1504_v21, %v713_v23 }
 0x37b   :  { %v715_v27 = vadd.f32 %v1504_v21, %v714_v25 }
 0x37d   :  { %v719_v29 = vsel %vm718_vm10, %v1504_v21, %v715_v27 }
 0x37e   :  { %v724_v30 = vsel %vm721_vm11, %v723_v28, %v719_v29 }
 0x37f   :  { %v726_v31 = vmul.f32 2.0, %v724_v30  ;;  %v728_v35 = vmul.f32 %v724_v30, %v678_v8  ;;  %v805_v8 = vld [vmem:[#allocation2 + $0x6] sm:$0x3] }
 0x381   :  { %v1400_v32 = vadd.f32 -1.0, %v726_v31 }
 0x383   :  { %730 = vrot.lane.b32.xlu2 %v1400_v32, %s1676_s7 }
 0x3dd   :  { %v731_v33 = vpop.permute.xlu2 %730 }
 0x3de   :  { %v733_v34 = vmul.f32 %v731_v33, %v724_v30 }
 0x3e0   :  { %735 = vrot.lane.b32.xlu2 %v733_v34, %s1673_s24 }
 0x43a   :  { %v736_v36 = vpop.permute.xlu2 %735 }
 0x43b   :  { %v738_v37 = vadd.f32 %v736_v36, %v728_v35 }
 0x43d   :  { %1505 = vtanh.f32 %v738_v37 }
 0x443   :  { %v1506_v38 = vpop.eup %1505 }
 0x444   :  { %741 = vrot.lane.b32.xlu0 %v1506_v38, %s1676_s7 }
 0x4b6   :  { %v742_v39 = vpop.permute.xlu0 %741 }
 0x4b7   :  { %v744_v40 = vmul.f32 %v742_v39, %v724_v30 }
 0x4b9   :  { %v746_v41 = vpack.c.bf16 %v744_v40, %v744_v40 }
 0x4bb   :  { %748 = vrot.lane.b32.xlu1 %v746_v41, %s1673_s24 }
 0x52d   :  { %v749_v42 = vpop.permute.xlu1 %748 }
 0x52e   :  { %1401 = vmatmul.msk.bf16.vlgmr.msra.gmra.mxu2 %vm629_vm7, %v749_v42 }
 0x5b1   :  { %v762_v44 = vpop.f32.mrf.mxu2 }
 0x5b2   :  { %v766_v45 = vadd.f32 %v762_v44, %v745_v43 }
 0x5b4   :  { %v1402_v46 = vmul.f32 -1.442695, %v766_v45 }
 0x5b6   :  { %1507 = vpow2.f32 %v1402_v46 }
 0x5b9   :  { %v764_v47 = vpop.f32.mrf.mxu2 }
 0x5bc   :  { %v1508_v48 = vpop.eup %1507 }
 0x5bd   :  { %v770_v49 = vadd.f32 1.0, %v1508_v48 }
 0x5bf   :  { %1509 = vrcp.f32 %v770_v49  ;;  %v782_v54 = vand.u32 2147483648, %v770_v49  ;;  %v780_v56 = vand.u32 2147483647, %v770_v49  ;;  %vm776_vm13 = vweird.f32 %v770_v49 }
 0x5c1   :  { %v783_v58 = vor.u32 1.1754944e-38, %v782_v54  ;;  %vm781_vm15 = vcmp.eq.f32.partialorder %v780_v56, 8.507059e+37 }
 0x5c5   :  { %v1510_v50 = vpop.eup %1509 }
 0x5c6   :  { %v772_v51 = vmul.f32 %v1510_v50, %v770_v49  ;;  %vm777_vm12 = vweird.f32 %v1510_v50 }
 0x5c7   :  { %vm778_vm14 = vmor %vm776_vm13, %vm777_vm12 }
 0x5c8   :  { %v773_v53 = vsub.f32 1.0, %v772_v51 }
 0x5ca   :  { %v774_v55 = vmul.f32 %v1510_v50, %v773_v53 }
 0x5cc   :  { %v775_v57 = vadd.f32 %v1510_v50, %v774_v55 }
 0x5ce   :  { %v779_v59 = vsel %vm778_vm14, %v1510_v50, %v775_v57 }
 0x5cf   :  { %v784_v60 = vsel %vm781_vm15, %v783_v58, %v779_v59 }
 0x5d0   :  { %v786_v61 = vmul.f32 2.0, %v784_v60  ;;  %v788_v1 = vmul.f32 %v784_v60, %v738_v37  ;;  %v865_v37 = vld [vmem:[#allocation2 + $0x8] sm:$0x3] }
 0x5d2   :  { %v1403_v62 = vadd.f32 -1.0, %v786_v61 }
 0x5d4   :  { %790 = vrot.lane.b32.xlu2 %v1403_v62, %s1676_s7 }
 0x62e   :  { %v791_v63 = vpop.permute.xlu2 %790 }
 0x62f   :  { %v793_v0 = vmul.f32 %v791_v63, %v784_v60 }
 0x631   :  { %795 = vrot.lane.b32.xlu0 %v793_v0, %s1673_s24 }
 0x6a3   :  { %v796_v2 = vpop.permute.xlu0 %795 }
 0x6a4   :  { %v798_v3 = vadd.f32 %v796_v2, %v788_v1 }
 0x6a6   :  { %1511 = vtanh.f32 %v798_v3 }
 0x6ac   :  { %v1512_v4 = vpop.eup %1511 }
 0x6ad   :  { %801 = vrot.lane.b32.xlu1 %v1512_v4, %s1676_s7 }
 0x71f   :  { %v802_v5 = vpop.permute.xlu1 %801 }
 0x720   :  { %v804_v6 = vmul.f32 %v802_v5, %v784_v60 }
 0x722   :  { %v806_v7 = vpack.c.bf16 %v804_v6, %v804_v6 }
 0x724   :  { %808 = vrot.lane.b32.xlu2 %v806_v7, %s1673_s24 }
 0x77e   :  { %v809_v52 = vpop.permute.xlu2 %808 }
 0x77f   :  { %1404 = vmatmul.msk.bf16.vlgmr.msra.gmra.mxu3 %vm629_vm7, %v809_v52 }
 0x802   :  { %v822_v9 = vpop.f32.mrf.mxu3 }
 0x803   :  { %v826_v10 = vadd.f32 %v822_v9, %v805_v8 }
 0x805   :  { %v1405_v11 = vmul.f32 -1.442695, %v826_v10 }
 0x807   :  { %1513 = vpow2.f32 %v1405_v11 }
 0x80a   :  { %v824_v12 = vpop.f32.mrf.mxu3 }
 0x80d   :  { %v1514_v13 = vpop.eup %1513 }
 0x80e   :  { %v830_v14 = vadd.f32 1.0, %v1514_v13 }
 0x810   :  { %1515 = vrcp.f32 %v830_v14  ;;  %v842_v18 = vand.u32 2147483648, %v830_v14  ;;  %v840_v20 = vand.u32 2147483647, %v830_v14  ;;  %vm836_vm1 = vweird.f32 %v830_v14 }
 0x812   :  { %v843_v22 = vor.u32 1.1754944e-38, %v842_v18  ;;  %vm841_vm3 = vcmp.eq.f32.partialorder %v840_v20, 8.507059e+37 }
 0x816   :  { %v1516_v15 = vpop.eup %1515 }
 0x817   :  { %v832_v16 = vmul.f32 %v1516_v15, %v830_v14  ;;  %vm837_vm0 = vweird.f32 %v1516_v15 }
 0x818   :  { %vm838_vm2 = vmor %vm836_vm1, %vm837_vm0 }
 0x819   :  { %v833_v17 = vsub.f32 1.0, %v832_v16 }
 0x81b   :  { %v834_v19 = vmul.f32 %v1516_v15, %v833_v17 }
 0x81d   :  { %v835_v21 = vadd.f32 %v1516_v15, %v834_v19 }
 0x81f   :  { %v839_v23 = vsel %vm838_vm2, %v1516_v15, %v835_v21 }
 0x820   :  { %v844_v24 = vsel %vm841_vm3, %v843_v22, %v839_v23 }
 0x821   :  { %v846_v25 = vmul.f32 2.0, %v844_v24  ;;  %v848_v29 = vmul.f32 %v844_v24, %v798_v3  ;;  %v925_v3 = vld [vmem:[#allocation2 + $0xa] sm:$0x3] }
 0x823   :  { %v1406_v26 = vadd.f32 -1.0, %v846_v25 }
 0x825   :  { %850 = vrot.lane.b32.xlu0 %v1406_v26, %s1676_s7 }
 0x897   :  { %v851_v27 = vpop.permute.xlu0 %850 }
 0x898   :  { %v853_v28 = vmul.f32 %v851_v27, %v844_v24 }
 0x89a   :  { %855 = vrot.lane.b32.xlu1 %v853_v28, %s1673_s24 }
 0x90c   :  { %v856_v30 = vpop.permute.xlu1 %855 }
 0x90d   :  { %v858_v31 = vadd.f32 %v856_v30, %v848_v29 }
 0x90f   :  { %1517 = vtanh.f32 %v858_v31 }
 0x915   :  { %v1518_v32 = vpop.eup %1517 }
 0x916   :  { %861 = vrot.lane.b32.xlu2 %v1518_v32, %s1676_s7 }
 0x970   :  { %v862_v33 = vpop.permute.xlu2 %861 }
 0x971   :  { %v864_v34 = vmul.f32 %v862_v33, %v844_v24 }
 0x973   :  { %v866_v35 = vpack.c.bf16 %v864_v34, %v864_v34 }
 0x975   :  { %868 = vrot.lane.b32.xlu0 %v866_v35, %s1673_s24 }
 0x9e7   :  { %v869_v36 = vpop.permute.xlu0 %868 }
 0x9e8   :  { %1407 = vmatmul.msk.bf16.vlgmr.msrb.gmra.mxu0 %vm629_vm7, %v869_v36 }
 0xa65   :  { %v882_v38 = vpop.f32.mrf.mxu0 }
 0xa66   :  { %v886_v39 = vadd.f32 %v882_v38, %v865_v37 }
 0xa68   :  { %v1408_v40 = vmul.f32 -1.442695, %v886_v39 }
 0xa6a   :  { %1519 = vpow2.f32 %v1408_v40 }
 0xa6d   :  { %v884_v41 = vpop.f32.mrf.mxu0 }
 0xa70   :  { %v1520_v42 = vpop.eup %1519 }
 0xa71   :  { %v890_v43 = vadd.f32 1.0, %v1520_v42 }
 0xa73   :  { %1521 = vrcp.f32 %v890_v43  ;;  %v902_v47 = vand.u32 2147483648, %v890_v43  ;;  %v900_v49 = vand.u32 2147483647, %v890_v43  ;;  %vm896_vm5 = vweird.f32 %v890_v43 }
 0xa75   :  { %v903_v51 = vor.u32 1.1754944e-38, %v902_v47  ;;  %vm901_vm8 = vcmp.eq.f32.partialorder %v900_v49, 8.507059e+37 }
 0xa79   :  { %v1522_v44 = vpop.eup %1521 }
 0xa7a   :  { %v892_v45 = vmul.f32 %v1522_v44, %v890_v43  ;;  %vm897_vm4 = vweird.f32 %v1522_v44 }
 0xa7b   :  { %vm898_vm6 = vmor %vm896_vm5, %vm897_vm4  ;;  %vm1111_vm4 = vcmask 254976  }
 0xa7c   :  { %v893_v46 = vsub.f32 1.0, %v892_v45 }
 0xa7e   :  { %v894_v48 = vmul.f32 %v1522_v44, %v893_v46 }
 0xa80   :  { %v895_v50 = vadd.f32 %v1522_v44, %v894_v48 }
 0xa82   :  { %v899_v53 = vsel %vm898_vm6, %v1522_v44, %v895_v50 }
 0xa83   :  { %v904_v54 = vsel %vm901_vm8, %v903_v51, %v899_v53 }
 0xa84   :  { %v906_v55 = vmul.f32 2.0, %v904_v54  ;;  %v908_v59 = vmul.f32 %v904_v54, %v858_v31  ;;  %v985_v31 = vld [vmem:[#allocation2 + $0xc] sm:$0x3] }
 0xa86   :  { %v1409_v56 = vadd.f32 -1.0, %v906_v55 }
 0xa88   :  { %910 = vrot.lane.b32.xlu1 %v1409_v56, %s1676_s7 }
 0xafa   :  { %v911_v57 = vpop.permute.xlu1 %910 }
 0xafb   :  { %v913_v58 = vmul.f32 %v911_v57, %v904_v54 }
 0xafd   :  { %915 = vrot.lane.b32.xlu2 %v913_v58, %s1673_s24 }
 0xb57   :  { %v916_v60 = vpop.permute.xlu2 %915 }
 0xb58   :  { %v918_v61 = vadd.f32 %v916_v60, %v908_v59 }
 0xb5a   :  { %1523 = vtanh.f32 %v918_v61 }
 0xb60   :  { %v1524_v62 = vpop.eup %1523 }
 0xb61   :  { %921 = vrot.lane.b32.xlu0 %v1524_v62, %s1676_s7 }
 0xbd3   :  { %v922_v63 = vpop.permute.xlu0 %921 }
 0xbd4   :  { %v924_v0 = vmul.f32 %v922_v63, %v904_v54 }
 0xbd6   :  { %v926_v1 = vpack.c.bf16 %v924_v0, %v924_v0 }
 0xbd8   :  { %928 = vrot.lane.b32.xlu1 %v926_v1, %s1673_s24 }
 0xc4a   :  { %v929_v2 = vpop.permute.xlu1 %928 }
 0xc4b   :  { %1410 = vmatmul.msk.bf16.vlgmr.msrb.gmra.mxu1 %vm629_vm7, %v929_v2 }
 0xcc8   :  { %v942_v4 = vpop.f32.mrf.mxu1 }
 0xcc9   :  { %v946_v5 = vadd.f32 %v942_v4, %v925_v3 }
 0xccb   :  { %v1411_v6 = vmul.f32 -1.442695, %v946_v5 }
 0xccd   :  { %1525 = vpow2.f32 %v1411_v6 }
 0xcd0   :  { %v944_v7 = vpop.f32.mrf.mxu1 }
 0xcd3   :  { %v1526_v52 = vpop.eup %1525 }
 0xcd4   :  { %v950_v8 = vadd.f32 1.0, %v1526_v52 }
 0xcd6   :  { %1527 = vrcp.f32 %v950_v8  ;;  %v962_v12 = vand.u32 2147483648, %v950_v8  ;;  %v960_v14 = vand.u32 2147483647, %v950_v8  ;;  %vm956_vm10 = vweird.f32 %v950_v8 }
 0xcd8   :  { %v963_v16 = vor.u32 1.1754944e-38, %v962_v12  ;;  %vm961_vm12 = vcmp.eq.f32.partialorder %v960_v14, 8.507059e+37 }
 0xcdc   :  { %v1528_v9 = vpop.eup %1527 }
 0xcdd   :  { %v952_v10 = vmul.f32 %v1528_v9, %v950_v8  ;;  %vm957_vm9 = vweird.f32 %v1528_v9 }
 0xcde   :  { %vm958_vm11 = vmor %vm956_vm10, %vm957_vm9 }
 0xcdf   :  { %v953_v11 = vsub.f32 1.0, %v952_v10 }
 0xce1   :  { %v954_v13 = vmul.f32 %v1528_v9, %v953_v11 }
 0xce3   :  { %v955_v15 = vadd.f32 %v1528_v9, %v954_v13 }
 0xce5   :  { %v959_v17 = vsel %vm958_vm11, %v1528_v9, %v955_v15 }
 0xce6   :  { %v964_v18 = vsel %vm961_vm12, %v963_v16, %v959_v17 }
 0xce7   :  { %v966_v19 = vmul.f32 2.0, %v964_v18  ;;  %v968_v23 = vmul.f32 %v964_v18, %v918_v61  ;;  %v1045_v61 = vld [vmem:[#allocation2 + $0xe] sm:$0x3] }
 0xce9   :  { %v1412_v20 = vadd.f32 -1.0, %v966_v19 }
 0xceb   :  { %970 = vrot.lane.b32.xlu2 %v1412_v20, %s1676_s7 }
 0xd45   :  { %v971_v21 = vpop.permute.xlu2 %970 }
 0xd46   :  { %v973_v22 = vmul.f32 %v971_v21, %v964_v18 }
 0xd48   :  { %975 = vrot.lane.b32.xlu0 %v973_v22, %s1673_s24 }
 0xdba   :  { %v976_v24 = vpop.permute.xlu0 %975 }
 0xdbb   :  { %v978_v25 = vadd.f32 %v976_v24, %v968_v23 }
 0xdbd   :  { %1529 = vtanh.f32 %v978_v25 }
 0xdc3   :  { %v1530_v26 = vpop.eup %1529 }
 0xdc4   :  { %981 = vrot.lane.b32.xlu1 %v1530_v26, %s1676_s7 }
 0xe36   :  { %v982_v27 = vpop.permute.xlu1 %981 }
 0xe37   :  { %v984_v28 = vmul.f32 %v982_v27, %v964_v18 }
 0xe39   :  { %v986_v29 = vpack.c.bf16 %v984_v28, %v984_v28 }
 0xe3b   :  { %988 = vrot.lane.b32.xlu2 %v986_v29, %s1673_s24 }
 0xe95   :  { %v989_v30 = vpop.permute.xlu2 %988 }
 0xe96   :  { %1413 = vmatmul.msk.bf16.vlgmr.msrb.gmra.mxu2 %vm629_vm7, %v989_v30 }
 0xf19   :  { %v1002_v32 = vpop.f32.mrf.mxu2 }
 0xf1a   :  { %v1006_v33 = vadd.f32 %v1002_v32, %v985_v31 }
 0xf1c   :  { %v1414_v34 = vmul.f32 -1.442695, %v1006_v33 }
 0xf1e   :  { %1531 = vpow2.f32 %v1414_v34 }
 0xf21   :  { %v1004_v35 = vpop.f32.mrf.mxu2 }
 0xf24   :  { %v1532_v36 = vpop.eup %1531 }
 0xf25   :  { %v1010_v37 = vadd.f32 1.0, %v1532_v36 }
 0xf27   :  { %1533 = vrcp.f32 %v1010_v37  ;;  %v1022_v41 = vand.u32 2147483648, %v1010_v37  ;;  %v1020_v43 = vand.u32 2147483647, %v1010_v37  ;;  %vm1016_vm14 = vweird.f32 %v1010_v37 }
 0xf29   :  { %v1023_v45 = vor.u32 1.1754944e-38, %v1022_v41  ;;  %vm1021_vm0 = vcmp.eq.f32.partialorder %v1020_v43, 8.507059e+37 }
 0xf2d   :  { %v1534_v38 = vpop.eup %1533 }
 0xf2e   :  { %v1012_v39 = vmul.f32 %v1534_v38, %v1010_v37  ;;  %vm1017_vm13 = vweird.f32 %v1534_v38 }
 0xf2f   :  { %vm1018_vm15 = vmor %vm1016_vm14, %vm1017_vm13 }
 0xf30   :  { %v1013_v40 = vsub.f32 1.0, %v1012_v39 }
 0xf32   :  { %v1014_v42 = vmul.f32 %v1534_v38, %v1013_v40 }
 0xf34   :  { %v1015_v44 = vadd.f32 %v1534_v38, %v1014_v42 }
 0xf36   :  { %v1019_v46 = vsel %vm1018_vm15, %v1534_v38, %v1015_v44 }
 0xf37   :  { %v1024_v47 = vsel %vm1021_vm0, %v1023_v45, %v1019_v46 }
 0xf38   :  { %v1026_v48 = vmul.f32 2.0, %v1024_v47  ;;  %v1028_v53 = vmul.f32 %v1024_v47, %v978_v25 }
 0xf3a   :  { %v1415_v49 = vadd.f32 -1.0, %v1026_v48 }
 0xf3c   :  { %1030 = vrot.lane.b32.xlu0 %v1415_v49, %s1676_s7 }
 0xfae   :  { %v1031_v50 = vpop.permute.xlu0 %1030 }
 0xfaf   :  { %v1033_v51 = vmul.f32 %v1031_v50, %v1024_v47 }
 0xfb1   :  { %1035 = vrot.lane.b32.xlu1 %v1033_v51, %s1673_s24 }
0x1023   :  { %v1036_v54 = vpop.permute.xlu1 %1035 }
0x1024   :  { %v1038_v55 = vadd.f32 %v1036_v54, %v1028_v53 }
0x1026   :  { %1535 = vtanh.f32 %v1038_v55 }
0x102c   :  { %v1536_v56 = vpop.eup %1535 }
0x102d   :  { %1041 = vrot.lane.b32.xlu2 %v1536_v56, %s1676_s7 }
0x1087   :  { %v1042_v57 = vpop.permute.xlu2 %1041 }
0x1088   :  { %v1044_v58 = vmul.f32 %v1042_v57, %v1024_v47 }
0x108a   :  { %v1046_v59 = vpack.c.bf16 %v1044_v58, %v1044_v58 }
0x108c   :  { %1048 = vrot.lane.b32.xlu0 %v1046_v59, %s1673_s24 }
0x10fe   :  { %v1049_v60 = vpop.permute.xlu0 %1048 }
0x10ff   :  { %1416 = vmatmul.msk.bf16.vlgmr.msrb.gmra.mxu3 %vm629_vm7, %v1049_v60 }
0x1182   :  { %v1062_v62 = vpop.f32.mrf.mxu3 }
0x1183   :  { %v1066_v63 = vadd.f32 %v1062_v62, %v1045_v61 }
0x1185   :  { %v1417_v0 = vmul.f32 -1.442695, %v1066_v63 }
0x1187   :  { %1537 = vpow2.f32 %v1417_v0 }
0x118a   :  { %v1064_v1 = vpop.f32.mrf.mxu3 }
0x118d   :  { %v1538_v2 = vpop.eup %1537 }
0x118e   :  { %v1070_v3 = vadd.f32 1.0, %v1538_v2 }
0x1190   :  { %1539 = vrcp.f32 %v1070_v3  ;;  %v1082_v7 = vand.u32 2147483648, %v1070_v3  ;;  %v1080_v8 = vand.u32 2147483647, %v1070_v3  ;;  %vm1076_vm2 = vweird.f32 %v1070_v3 }
0x1192   :  { %v1083_v10 = vor.u32 1.1754944e-38, %v1082_v7  ;;  %vm1081_vm7 = vcmp.eq.f32.partialorder %v1080_v8, 8.507059e+37 }
0x1196   :  { %v1540_v4 = vpop.eup %1539 }
0x1197   :  { %v1072_v5 = vmul.f32 %v1540_v4, %v1070_v3  ;;  %vm1077_vm1 = vweird.f32 %v1540_v4 }
0x1198   :  { %vm1078_vm3 = vmor %vm1076_vm2, %vm1077_vm1 }
0x1199   :  { %v1073_v6 = vsub.f32 1.0, %v1072_v5 }
0x119b   :  { %v1074_v52 = vmul.f32 %v1540_v4, %v1073_v6 }
0x119d   :  { %v1075_v9 = vadd.f32 %v1540_v4, %v1074_v52 }
0x119f   :  { %v1079_v11 = vsel %vm1078_vm3, %v1540_v4, %v1075_v9 }
0x11a0   :  { %v1084_v12 = vsel %vm1081_vm7, %v1083_v10, %v1079_v11 }
0x11a1   :  { %v1086_v13 = vmul.f32 2.0, %v1084_v12  ;;  %v1088_v17 = vmul.f32 %v1084_v12, %v1038_v55 }
0x11a3   :  { %v1418_v14 = vadd.f32 -1.0, %v1086_v13 }
0x11a5   :  { %1090 = vrot.lane.b32.xlu1 %v1418_v14, %s1676_s7 }
0x1217   :  { %v1091_v15 = vpop.permute.xlu1 %1090 }
0x1218   :  { %v1093_v16 = vmul.f32 %v1091_v15, %v1084_v12 }
0x121a   :  { %1095 = vrot.lane.b32.xlu2 %v1093_v16, %s1673_s24 }
0x1274   :  { %v1096_v18 = vpop.permute.xlu2 %1095 }
0x1275   :  { %v1098_v19 = vadd.f32 %v1096_v18, %v1088_v17 }
0x1277   :  { %1541 = vtanh.f32 %v1098_v19 }
0x127d   :  { %v1542_v20 = vpop.eup %1541 }
0x127e   :  { %1101 = vrot.lane.b32.xlu0 %v1542_v20, %s1676_s7 }
0x12f0   :  { %v1102_v21 = vpop.permute.xlu0 %1101 }
0x12f1   :  { %v1104_v22 = vmul.f32 %v1102_v21, %v1084_v12 }
0x12f3   :  { %1106 = vst [vmem:[#allocation1] ss:$4 sm:$0xff] %v1104_v22 }
0x12fa   :  { %v1107_v23 = vld.sshfl [vmem:[#allocation1] sm:$0xff pattern:$0x73625140] }
0x12fb   :  { %1108 = vrot.lane.b32.xlu1 %v1107_v23, %s1673_s24 }
0x136d   :  { %v1109_v24 = vpop.permute.xlu1 %1108 }
0x136e   :  { %1112 = vst.msk [vmem:[#allocation11] sm:$0x3] %vm1111_vm4, %v1109_v24 }
0x136f   :  { %1123 = dma.vmem_to_hbm [thread:$0]  %s1119_s3, 32, %s1121_s13, [#allocation5]  }
0x1370   :  { %1669 = dma.done.wait [#allocation5], 32  }
0x1371   :  { %1670 = vsyncadd [#allocation5], 4294967264 }
0x1372   :  { %1128 = vsyncpa [#allocation4], 1 }
0x1373   :  { %1129 = vsyncpa [#allocation7], 1 }
0x1374   :  { %1130 = vsyncpa [#allocation10], 1 }
0x1375   :  { %1131 = vsyncpa [#allocation5], 1 }

</bundles_post_ra>
